<compile_context>
chip_gen: v6e
topology: v6e:2x2x1
jax: 0.10.0
libtpu: 0.0.40
codegen_flags: <defaults>
</compile_context>

<pallas_src>
import functools
import math

import jax
import jax.numpy as jnp
from jax.experimental import pallas as pl
from jax.experimental.pallas import tpu as pltpu


# ------------------------------ activations ------------------------------

def _silu(x):
    return x * jax.nn.sigmoid(x)


_ACTS = {
    "silu": _silu,
    "relu": lambda x: jnp.maximum(x, 0.0),
    "identity": lambda x: x,
}

# silu_opt -> activation.
# TODO(synk): CustomSiLU (silu_opt=2) is not defined in the provided source; assumed x*sigmoid(x).
_ACT_FROM_SILU_OPT = {0: "silu", 1: "relu", 2: "silu", 3: "identity"}


# ----------------------------- Pallas kernels -----------------------------

def _matmul_bias_act_kernel(x_ref, w_ref, b_ref, o_ref, acc_ref, *, act, mxu_dtype):
    """One (M,K) tile of act(x @ w + b): bf16 MXU matmul, f32 accumulate, fused epilogue."""
    kk = pl.program_id(1)

    @pl.when(kk == 0)
    def _():
        acc_ref[...] = jnp.zeros_like(acc_ref)

    x = x_ref[...]
    w = w_ref[...]
    if mxu_dtype is not None:
        x = x.astype(mxu_dtype)
        w = w.astype(mxu_dtype)
    acc_ref[...] += jnp.dot(x, w, preferred_element_type=jnp.float32)

    @pl.when(kk == pl.num_programs(1) - 1)
    def _():
        y = acc_ref[...] + b_ref[...].astype(jnp.float32)
        y = _ACTS[act](y)
        o_ref[...] = y.astype(o_ref.dtype)


def _pick_block_k(K):
    """Whole-K for small reductions; 128-aligned K blocks only when K is large."""
    if K <= 1024:
        return K
    for cand in (512, 256, 128):
        if K % cand == 0:
            return cand
    return K  # non-128-multiple K stays unblocked (lane constraint on the x tile)


def matmul_bias_act(xm, w, b, act, *, block_m=512, mxu_dtype=jnp.bfloat16):
    """xm: [M, K], w: [K, N], b: [N]  ->  act(xm @ w + b): [M, N]."""
    M, K = xm.shape
    N = w.shape[1]
    tm = min(block_m, M)
    if tm < M:
        tm = max(8, (tm // 8) * 8)        # keep M tiles sublane (8) aligned
    tk = _pick_block_k(K)
    grid = (pl.cdiv(M, tm), pl.cdiv(K, tk))
    if mxu_dtype is not None:
        w = w.astype(mxu_dtype)           # cast once; weight tiles are re-read per M tile
    return pl.pallas_call(
        functools.partial(_matmul_bias_act_kernel, act=act, mxu_dtype=mxu_dtype),
        out_shape=jax.ShapeDtypeStruct((M, N), xm.dtype),
        grid=grid,
        in_specs=[
            pl.BlockSpec((tm, tk), lambda i, k: (i, k)),   # activations: tiled along M and K
            pl.BlockSpec((tk, N), lambda i, k: (k, 0)),    # weights: K-tiled, N whole
            pl.BlockSpec((1, N), lambda i, k: (0, 0)),     # folded BN bias
        ],
        out_specs=pl.BlockSpec((tm, N), lambda i, k: (i, 0)),
        scratch_shapes=[pltpu.VMEM((tm, N), jnp.float32)],
        compiler_params=pltpu.CompilerParams(
            dimension_semantics=("parallel", "arbitrary"),
            vmem_limit_bytes=32 * 1024 * 1024,
        ),
    )(xm, w, b.reshape(1, N))


def _dw_conv_kernel(x_ref, w_ref, b_ref, o_ref, *, k, act):
    """Depthwise KxK conv (stride 1) on one pre-padded NHWC image; BN + act fused."""
    Ho, Wo, C = o_ref.shape[1], o_ref.shape[2], o_ref.shape[3]
    acc = jnp.zeros((Ho, Wo, C), jnp.float32)
    for kh in range(k):
        # One aligned full-width slab load per kh tap (offset is on an untiled axis).
        slab = x_ref[0, kh:kh + Ho, :, :].astype(jnp.float32)
        for kw in range(k):
            # TODO(synk): replace the kw shift with a pltpu.roll sublane rotate (keeps the
            # shift on the XLU slot) once verified on the target Mosaic version.
            tap = slab[:, kw:kw + Wo, :]
            acc = acc + tap * w_ref[kh * k + kw, :].astype(jnp.float32)
    y = acc + b_ref[0].astype(jnp.float32)
    y = _ACTS[act](y)
    o_ref[0] = y.astype(o_ref.dtype)


def dw_conv_bn_act(x_nhwc, w_kkc, b, act, *, k, pad):
    """Depthwise KxK conv (stride 1, zero pad) + folded BN + act.  w_kkc: [k*k, C]."""
    B, H, W, C = x_nhwc.shape
    Ho = H + 2 * pad - k + 1
    Wo = W + 2 * pad - k + 1
    xp = jnp.pad(x_nhwc, ((0, 0), (pad, pad), (pad, pad), (0, 0)))
    # TODO(synk): for large feature maps, block spatially (row blocks + halo) so a whole
    # padded image does not have to fit in VMEM on v7x (64 MiB / TensorCore).
    return pl.pallas_call(
        functools.partial(_dw_conv_kernel, k=k, act=act),
        out_shape=jax.ShapeDtypeStruct((B, Ho, Wo, C), x_nhwc.dtype),
        grid=(B,),
        in_specs=[
            pl.BlockSpec((1, H + 2 * pad, W + 2 * pad, C), lambda bi: (bi, 0, 0, 0)),
            pl.BlockSpec((k * k, C), lambda bi: (0, 0)),
            pl.BlockSpec((1, C), lambda bi: (0, 0)),
        ],
        out_specs=pl.BlockSpec((1, Ho, Wo, C), lambda bi: (bi, 0, 0, 0)),
        compiler_params=pltpu.CompilerParams(
            dimension_semantics=("parallel",),
            vmem_limit_bytes=32 * 1024 * 1024,
        ),
    )(xp, w_kkc, b.reshape(1, C))


# ------------------------------ conv wrappers ------------------------------

def _im2col(x_nhwc, k, s, pad):
    """NHWC -> (B, Ho, Wo, k*k*C) patches; handles stride and zero padding exactly."""
    B, H, W, C = x_nhwc.shape
    Ho = (H + 2 * pad - k) // s + 1
    Wo = (W + 2 * pad - k) // s + 1
    xp = jnp.pad(x_nhwc, ((0, 0), (pad, pad), (pad, pad), (0, 0)))
    cols = []
    for kh in range(k):
        for kw in range(k):
            cols.append(jax.lax.slice(
                xp,
                (0, kh, kw, 0),
                (B, kh + (Ho - 1) * s + 1, kw + (Wo - 1) * s + 1, C),
                (1, s, s, 1)))
    return jnp.concatenate(cols, axis=-1), Ho, Wo


def dense_conv_bn_act(x_nhwc, w_oikk, b, act, *, k, s, pad):
    """Groups=1 KxK conv + folded BN + act via the tiled matmul kernel."""
    B, H, W, Cin = x_nhwc.shape
    Cout = w_oikk.shape[0]
    if k == 1 and pad == 0:
        xs = x_nhwc[:, ::s, ::s, :] if s > 1 else x_nhwc
        Ho, Wo = xs.shape[1], xs.shape[2]
        xm = xs.reshape(B * Ho * Wo, Cin)
        w_col = jnp.transpose(w_oikk[:, :, 0, 0], (1, 0))                       # [Cin, Cout]
    else:
        # TODO(synk): a fused halo-blocked KxK kernel would avoid the k^2 im2col HBM expansion.
        xcol, Ho, Wo = _im2col(x_nhwc, k, s, pad)
        xm = xcol.reshape(B * Ho * Wo, k * k * Cin)
        w_col = jnp.transpose(w_oikk, (2, 3, 1, 0)).reshape(k * k * Cin, Cout)  # [k*k*Cin, Cout]
    out = matmul_bias_act(xm, w_col, b, act)
    return out.reshape(B, Ho, Wo, Cout)


def _fold_bn(params, eps=1e-3):
    """Fold eval-mode BatchNorm2d(eps=1e-3) into the (bias-free) conv weights."""
    scale = params["gamma"] / jnp.sqrt(params["var"] + eps)
    w = params["w"] * scale[:, None, None, None]
    bias = params["beta"] - params["mean"] * scale
    return w, bias


def conv_forward(x_nchw, params, *, k=1, s=1, pad=0, g=1, silu_opt=0):
    """Conv(in_ch, out_ch, silu_opt, k, s, p, g).forward(x), NCHW in / NCHW out."""
    act = _ACT_FROM_SILU_OPT[silu_opt]
    w, bias = _fold_bn(params)
    x = jnp.transpose(x_nchw, (0, 2, 3, 1))          # NCHW -> NHWC (channels on the lane axis)
    Cin = x.shape[-1]
    Cout = w.shape[0]
    if g == Cin and Cout == Cin:                      # depthwise
        w_kkc = jnp.transpose(w[:, 0, :, :], (1, 2, 0)).reshape(k * k, Cin)
        y = dw_conv_bn_act(x, w_kkc, bias, act, k=k, pad=pad)
        if s > 1:
            # TODO(synk): dedicated strided depthwise kernel (this subsamples the s=1 output).
            y = y[:, ::s, ::s, :]
    elif g == 1:
        y = dense_conv_bn_act(x, w, bias, act, k=k, s=s, pad=pad)
    else:                                             # generic grouped conv
        cin_g, cout_g = Cin // g, Cout // g
        outs = []
        for gi in range(g):
            outs.append(dense_conv_bn_act(
                x[..., gi * cin_g:(gi + 1) * cin_g],
                w[gi * cout_g:(gi + 1) * cout_g],
                bias[gi * cout_g:(gi + 1) * cout_g],
                act, k=k, s=s, pad=pad))
        y = jnp.concatenate(outs, axis=-1)
    return jnp.transpose(y, (0, 3, 1, 2))             # NHWC -> NCHW


# --------------------------- reference & params ---------------------------

def conv_reference(x_nchw, params, *, k=1, s=1, pad=0, g=1, silu_opt=0):
    """Pure-JAX f32 reference of the PyTorch module (eval-mode BN)."""
    y = jax.lax.conv_general_dilated(
        x_nchw, params["w"], window_strides=(s, s),
        padding=((pad, pad), (pad, pad)), feature_group_count=g,
        dimension_numbers=("NCHW", "OIHW", "NCHW"))
    scale = params["gamma"] / jnp.sqrt(params["var"] + 1e-3)
    bias = params["beta"] - params["mean"] * scale
    y = y * scale[None, :, None, None] + bias[None, :, None, None]
    return _ACTS[_ACT_FROM_SILU_OPT[silu_opt]](y)


def make_conv_params(key, in_ch, out_ch, k=1, g=1):
    k1, k2, k3, k4, k5 = jax.random.split(key, 5)
    fan_in = (in_ch // g) * k * k
    return {
        "w": jax.random.normal(k1, (out_ch, in_ch // g, k, k), jnp.float32) / math.sqrt(fan_in),
        "gamma": 1.0 + 0.1 * jax.random.normal(k2, (out_ch,), jnp.float32),
        "beta": 0.1 * jax.random.normal(k3, (out_ch,), jnp.float32),
        "mean": 0.1 * jax.random.normal(k4, (out_ch,), jnp.float32),
        "var": 1.0 + 0.1 * jnp.abs(jax.random.normal(k5, (out_ch,), jnp.float32)),
    }


# ----------------------------------- main -----------------------------------

if __name__ == "__main__":
    key = jax.random.PRNGKey(0)
    keys = jax.random.split(key, 8)
    B, Cin, H, W = 2, 32, 16, 16
    x = jax.random.normal(keys[0], (B, Cin, H, W), jnp.float32)

    #        name          out_ch silu_opt k  s  p  g
    cases = [
        ("pw_silu",        64,    0,       1, 1, 0, 1),     # module defaults: 1x1 + BN + SiLU
        ("k3_same_relu",   64,    1,       3, 1, 1, 1),     # 3x3 'same' + BN + ReLU
        ("k3_s2_silu",     64,    0,       3, 2, 1, 1),     # strided 3x3 downsample + BN + SiLU
        ("dw3x3_identity", Cin,   3,       3, 1, 1, Cin),   # depthwise 3x3 + BN + Identity
    ]

    for idx, (name, cout, silu_opt, k, s, p, g) in enumerate(cases):
        params = make_conv_params(keys[idx + 1], Cin, cout, k=k, g=g)
        fwd = jax.jit(functools.partial(conv_forward, k=k, s=s, pad=p, g=g, silu_opt=silu_opt))
        out = jax.block_until_ready(fwd(x, params))
        ref = conv_reference(x, params, k=k, s=s, pad=p, g=g, silu_opt=silu_opt)
        assert out.shape == ref.shape, (name, out.shape, ref.shape)
        assert bool(jnp.all(jnp.isfinite(out))), name
        max_err = float(jnp.max(jnp.abs(out - ref)))
        assert bool(jnp.allclose(out, ref, atol=5e-2, rtol=5e-2)), (name, max_err)

    print("KERNEL_OK")
</pallas_src>

<mosaic_0001>
module attributes {stable_mosaic.version = 11 : i64} {
  func.func @_matmul_bias_act_kernel(%arg0: i32, %arg1: i32, %arg2: memref<512x32xf32, #tpu.memory_space<vmem>>, %arg3: memref<32x64xbf16, #tpu.memory_space<vmem>>, %arg4: memref<1x64xf32, #tpu.memory_space<vmem>>, %arg5: memref<512x64xf32, #tpu.memory_space<vmem>>, %arg6: memref<512x64xf32, #tpu.memory_space<vmem>>) attributes {dimension_semantics = [#tpu.dimension_semantics<parallel>, #tpu.dimension_semantics<arbitrary>], iteration_bounds = array<i64: 1, 1>, scalar_prefetch = 0 : i64, scratch_operands = 1 : i64, tpu.core_type = #tpu.core_type<tc>, window_params = [{transform_indices = @transform_0, window_bounds = array<i64: 512, 32>}, {transform_indices = @transform_1, window_bounds = array<i64: 32, 64>}, {pipeline_mode = #tpu.pipeline_mode<synchronous>, transform_indices = @transform_2, window_bounds = array<i64: 1, 64>}, {transform_indices = @transform_3, window_bounds = array<i64: 512, 64>}]} {
    %c0_i32 = arith.constant 0 : i32
    %0 = arith.cmpi eq, %arg1, %c0_i32 : i32
    %1 = arith.extui %0 : i1 to i32
    %c0_i32_0 = arith.constant 0 : i32
    %2 = arith.cmpi ne, %1, %c0_i32_0 : i32
    scf.if %2 {
      %cst_10 = arith.constant 0.000000e+00 : f32
      %13 = vector.broadcast %cst_10 : f32 to vector<512x64xf32>
      %c0_11 = arith.constant 0 : index
      %c0_12 = arith.constant 0 : index
      %14 = vector.load %arg6[%c0_11, %c0_12] : memref<512x64xf32, #tpu.memory_space<vmem>>, vector<512x64xf32>
      tpu.vector_store %arg6[%c0_11, %c0_12], %13 {strides = array<i32>} : memref<512x64xf32, #tpu.memory_space<vmem>>, vector<512x64xf32>,
    } else {
    }
    %c0 = arith.constant 0 : index
    %c0_1 = arith.constant 0 : index
    %3 = vector.load %arg2[%c0, %c0_1] : memref<512x32xf32, #tpu.memory_space<vmem>>, vector<512x32xf32>
    %c0_2 = arith.constant 0 : index
    %c0_3 = arith.constant 0 : index
    %4 = vector.load %arg3[%c0_2, %c0_3] : memref<32x64xbf16, #tpu.memory_space<vmem>>, vector<32x64xbf16>
    %5 = arith.truncf %3 : vector<512x32xf32> to vector<512x32xbf16>
    %c0_4 = arith.constant 0 : index
    %c0_5 = arith.constant 0 : index
    %6 = vector.load %arg6[%c0_4, %c0_5] : memref<512x64xf32, #tpu.memory_space<vmem>>, vector<512x64xf32>
    %cst = arith.constant dense<0.000000e+00> : vector<512x64xf32>
    %7 = tpu.matmul %5, %4, %cst {dimension_numbers = #tpu.dot_dimension_numbers<[1], [0], [0], [1], [0, 0, 1, 1], [], []>} : vector<512x32xbf16>, vector<32x64xbf16>, vector<512x64xf32> -> vector<512x64xf32>
    %8 = arith.addf %6, %7 : vector<512x64xf32>
    %c0_6 = arith.constant 0 : index
    %c0_7 = arith.constant 0 : index
    %9 = vector.load %arg6[%c0_6, %c0_7] : memref<512x64xf32, #tpu.memory_space<vmem>>, vector<512x64xf32>
    tpu.vector_store %arg6[%c0_6, %c0_7], %8 {strides = array<i32>} : memref<512x64xf32, #tpu.memory_space<vmem>>, vector<512x64xf32>,
    %c0_i32_8 = arith.constant 0 : i32
    %10 = arith.cmpi eq, %arg1, %c0_i32_8 : i32
    %11 = arith.extui %10 : i1 to i32
    %c0_i32_9 = arith.constant 0 : i32
    %12 = arith.cmpi ne, %11, %c0_i32_9 : i32
    scf.if %12 {
      %c0_10 = arith.constant 0 : index
      %c0_11 = arith.constant 0 : index
      %13 = vector.load %arg6[%c0_10, %c0_11] : memref<512x64xf32, #tpu.memory_space<vmem>>, vector<512x64xf32>
      %c0_12 = arith.constant 0 : index
      %c0_13 = arith.constant 0 : index
      %14 = vector.load %arg4[%c0_12, %c0_13] : memref<1x64xf32, #tpu.memory_space<vmem>>, vector<1x64xf32>
      %15 = vector.broadcast %14 : vector<1x64xf32> to vector<512x64xf32>
      %16 = arith.addf %13, %15 : vector<512x64xf32>
      %17 = arith.negf %16 : vector<512x64xf32>
      %18 = math.exp %17 : vector<512x64xf32>
      %cst_14 = arith.constant 1.000000e+00 : f32
      %19 = vector.broadcast %cst_14 : f32 to vector<512x64xf32>
      %20 = arith.addf %19, %18 : vector<512x64xf32>
      %21 = arith.divf %19, %20 : vector<512x64xf32>
      %22 = arith.mulf %16, %21 : vector<512x64xf32>
      %c0_15 = arith.constant 0 : index
      %c0_16 = arith.constant 0 : index
      %23 = vector.load %arg5[%c0_15, %c0_16] : memref<512x64xf32, #tpu.memory_space<vmem>>, vector<512x64xf32>
      tpu.vector_store %arg5[%c0_15, %c0_16], %22 {strides = array<i32>} : memref<512x64xf32, #tpu.memory_space<vmem>>, vector<512x64xf32>,
    } else {
    }
    return
  }
  func.func @transform_0(%arg0: i32, %arg1: i32) -> (i32, i32) {
    %c0_i32 = arith.constant 0 : i32
    return %arg0, %arg1 : i32, i32
  }
  func.func @transform_1(%arg0: i32, %arg1: i32) -> (i32, i32) {
    %c0_i32 = arith.constant 0 : i32
    %c0_i32_0 = arith.constant 0 : i32
    return %arg1, %c0_i32 : i32, i32
  }
  func.func @transform_2(%arg0: i32, %arg1: i32) -> (i32, i32) {
    %c0_i32 = arith.constant 0 : i32
    %c0_i32_0 = arith.constant 0 : i32
    %c0_i32_1 = arith.constant 0 : i32
    return %c0_i32, %c0_i32_0 : i32, i32
  }
  func.func @transform_3(%arg0: i32, %arg1: i32) -> (i32, i32) {
    %c0_i32 = arith.constant 0 : i32
    %c0_i32_0 = arith.constant 0 : i32
    return %arg0, %c0_i32 : i32, i32
  }
}

</mosaic_0001>

<bundles_post_ra>
// kernel: conv_forward.1
= control target key start
LH: loop header
LB: loop body
LE: loop exit
PB: predicated region body
PF: predicated region fallthrough
CT: control target
= control target key end

     0   :  { %8 = vsyncpa [#allocation4], 0  ;;  %s2745_s0 = inlined_call_operand.hbm [shape: f32[512,32], index: 0, kind: input, shape index: {}]   ;;  %s2746_s1 = inlined_call_operand.vmem [shape: bf16[32,64], index: 1, kind: input, shape index: {}]   ;;  %s2747_s2 = inlined_call_operand.vmem [shape: f32[1,64], index: 2, kind: input, shape index: {}]   ;;  %s2748_s3 = inlined_call_operand.hbm [shape: f32[512,64], index: 3, kind: output, shape index: {}]  }
   0x1   :  { %9 = vsyncpa [#allocation5], 0  ;;  %s1970_s12 = smov [#allocation3]  }
   0x2   :  { %s15_s13 = sshll.u32 %s1970_s12, 4  ;;  %s16_s13 = int_to_ptr.vmem [resolvable:$true] %s15_s13 }
   0x3   :  { %s1934_s14 = scalar_lea.vmem %s16_s13, 8192  ;;  %p1939_p1 = scmp.lt.s32.totalorder %s16_s13, %s16_s13 }
   0x4   :  { %p1935_p0 = scmp.ne.s32.totalorder %s16_s13, %s1934_s14  ;;  %p1940_p2 = scmp.lt.s32.totalorder %s1934_s14, %s1934_s14 }
   0x6   :  { %p1941_p3 = por %p1940_p2, %p1939_p1 }
   0x8   :  { %p1942_p4 = pnand %p1941_p3, %p1935_p0 }
   0xa   :  { %1945 = shalt.err (!%p1942_p4)
}
   0xb   :  { %s1971_s15 = smov 128   ;;  %s1972_s16 = smov 8  }
   0xc   :  { %21 = dma.hbm_to_vmem [thread:$0]  %s2745_s0, 8192, %s16_s13, [#allocation4], %s1971_s15, %s1971_s15, %s1972_s16  }
   0xd   :  { %1966 = dma.done.wait [#allocation4], 8192  }
   0xe   :  { %1967 = vsyncadd [#allocation4], 4294959104  ;;  %vm34_vm0 = vcmask 523264   ;;  %v1973_v0 = vmov 0.0   ;;  %v1667_v1 = vld [vmem:[%s2746_s1 + $0x8] sm:$0xff]   ;;  %v1668_v2 = vld [vmem:[%s2746_s1] sm:$0xff]  }
   0xf   :  { %37 = vst.msk [vmem:[#allocation2 + $0x10] sm:$0xff] %vm34_vm0, %v1973_v0  ;;  %35 = vst.msk [vmem:[#allocation2] sm:$0xff] %vm34_vm0, %v1973_v0  ;;  %1590 = vmatprep.subr.bf16.mxu0 %v1667_v1  ;;  %1658 = vmatprep.subr.bf16.mxu1 %v1667_v1  ;;  %v99_v3 = vld [vmem:[#allocation3] sm:$0xff]  ;;  %v100_v4 = vld [vmem:[#allocation3 + $0x8] sm:$0xff]  ;;  %vm275_vm1 = vcmask 261120  }
  0x10   :  { %36 = vst.msk [vmem:[#allocation2 + $0x8] sm:$0xff] %vm34_vm0, %v1973_v0  ;;  %38 = vst.msk [vmem:[#allocation2 + $0x18] sm:$0xff] %vm34_vm0, %v1973_v0  ;;  %v131_v5 = vld [vmem:[#allocation3 + $0x100] sm:$0xff]  ;;  %1591 = vmatpush3.bf16.msra.mxu0 %v1667_v1  ;;  %1660 = vmatpush3.bf16.msra.mxu1 %v1667_v1  ;;  %v167_v6 = vpack.c.bf16 %v100_v4, %v99_v3  ;;  %v132_v7 = vld [vmem:[#allocation3 + $0x108] sm:$0xff] }
  0x11   :  { %39 = vst.msk [vmem:[#allocation2 + $0x20] sm:$0xff] %vm34_vm0, %v1973_v0  ;;  %40 = vst.msk [vmem:[#allocation2 + $0x28] sm:$0xff] %vm34_vm0, %v1973_v0  ;;  %v101_v8 = vld [vmem:[#allocation3 + $0x10] sm:$0xff]  ;;  %v102_v9 = vld [vmem:[#allocation3 + $0x18] sm:$0xff]  ;;  %1592 = vmatprep.subr.bf16.mxu0 %v1668_v2  ;;  %1659 = vmatprep.subr.bf16.mxu1 %v1668_v2  ;;  %v183_v10 = vpack.c.bf16 %v132_v7, %v131_v5 }
  0x12   :  { %41 = vst.msk [vmem:[#allocation2 + $0x30] sm:$0xff] %vm34_vm0, %v1973_v0  ;;  %42 = vst.msk [vmem:[#allocation2 + $0x38] sm:$0xff] %vm34_vm0, %v1973_v0  ;;  %v133_v11 = vld [vmem:[#allocation3 + $0x110] sm:$0xff]  ;;  %v134_v12 = vld [vmem:[#allocation3 + $0x118] sm:$0xff]  ;;  %1594 = vmatprep.mubr.msk.bf16.mxu0 %vm275_vm1, %v167_v6  ;;  %v168_v17 = vpack.c.bf16 %v102_v9, %v101_v8 }
  0x13   :  { %43 = vst.msk [vmem:[#allocation2 + $0x40] sm:$0xff] %vm34_vm0, %v1973_v0  ;;  %44 = vst.msk [vmem:[#allocation2 + $0x48] sm:$0xff] %vm34_vm0, %v1973_v0  ;;  %v103_v13 = vld [vmem:[#allocation3 + $0x20] sm:$0xff]  ;;  %v104_v14 = vld [vmem:[#allocation3 + $0x28] sm:$0xff]  ;;  %1626 = vmatprep.mubr.msk.bf16.mxu1 %vm275_vm1, %v183_v10  ;;  %v184_v18 = vpack.c.bf16 %v134_v12, %v133_v11 }
  0x14   :  { %45 = vst.msk [vmem:[#allocation2 + $0x50] sm:$0xff] %vm34_vm0, %v1973_v0  ;;  %46 = vst.msk [vmem:[#allocation2 + $0x58] sm:$0xff] %vm34_vm0, %v1973_v0  ;;  %v135_v15 = vld [vmem:[#allocation3 + $0x120] sm:$0xff]  ;;  %v136_v16 = vld [vmem:[#allocation3 + $0x128] sm:$0xff]  ;;  %1593 = vmatpush3.bf16.msra.mxu0 %v1668_v2  ;;  %1661 = vmatpush3.bf16.msra.mxu1 %v1668_v2  ;;  %v169_v19 = vpack.c.bf16 %v104_v14, %v103_v13 }
  0x15   :  { %47 = vst.msk [vmem:[#allocation2 + $0x60] sm:$0xff] %vm34_vm0, %v1973_v0  ;;  %48 = vst.msk [vmem:[#allocation2 + $0x68] sm:$0xff] %vm34_vm0, %v1973_v0  ;;  %v185_v20 = vpack.c.bf16 %v136_v16, %v135_v15  ;;  %v105_v21 = vld [vmem:[#allocation3 + $0x30] sm:$0xff]  ;;  %v106_v22 = vld [vmem:[#allocation3 + $0x38] sm:$0xff] }
  0x16   :  { %49 = vst.msk [vmem:[#allocation2 + $0x70] sm:$0xff] %vm34_vm0, %v1973_v0  ;;  %50 = vst.msk [vmem:[#allocation2 + $0x78] sm:$0xff] %vm34_vm0, %v1973_v0  ;;  %v137_v23 = vld [vmem:[#allocation3 + $0x130] sm:$0xff]  ;;  %v138_v24 = vld [vmem:[#allocation3 + $0x138] sm:$0xff]  ;;  %v170_v29 = vpack.c.bf16 %v106_v22, %v105_v21 }
  0x17   :  { %51 = vst.msk [vmem:[#allocation2 + $0x80] sm:$0xff] %vm34_vm0, %v1973_v0  ;;  %52 = vst.msk [vmem:[#allocation2 + $0x88] sm:$0xff] %vm34_vm0, %v1973_v0  ;;  %1595 = vmatmul.mubr.msk.bf16.vlgmr.msra.gmra.mxu0 %vm275_vm1, %v168_v17  ;;  %1627 = vmatmul.mubr.msk.bf16.vlgmr.msra.gmra.mxu1 %vm275_vm1, %v184_v18  ;;  %v107_v25 = vld [vmem:[#allocation3 + $0x40] sm:$0xff]  ;;  %v108_v26 = vld [vmem:[#allocation3 + $0x48] sm:$0xff]  ;;  %v186_v30 = vpack.c.bf16 %v138_v24, %v137_v23 }
  0x18   :  { %53 = vst.msk [vmem:[#allocation2 + $0x90] sm:$0xff] %vm34_vm0, %v1973_v0  ;;  %54 = vst.msk [vmem:[#allocation2 + $0x98] sm:$0xff] %vm34_vm0, %v1973_v0  ;;  %1598 = vmatprep.mubr.msk.bf16.mxu0 %vm275_vm1, %v169_v19  ;;  %1630 = vmatprep.mubr.msk.bf16.mxu1 %vm275_vm1, %v185_v20  ;;  %v139_v27 = vld [vmem:[#allocation3 + $0x140] sm:$0xff]  ;;  %v140_v28 = vld [vmem:[#allocation3 + $0x148] sm:$0xff]  ;;  %v171_v31 = vpack.c.bf16 %v108_v26, %v107_v25 }
  0x19   :  { %55 = vst.msk [vmem:[#allocation2 + $0xa0] sm:$0xff] %vm34_vm0, %v1973_v0  ;;  %56 = vst.msk [vmem:[#allocation2 + $0xa8] sm:$0xff] %vm34_vm0, %v1973_v0  ;;  %v187_v32 = vpack.c.bf16 %v140_v28, %v139_v27  ;;  %v109_v33 = vld [vmem:[#allocation3 + $0x50] sm:$0xff]  ;;  %v110_v34 = vld [vmem:[#allocation3 + $0x58] sm:$0xff] }
  0x1a   :  { %57 = vst.msk [vmem:[#allocation2 + $0xb0] sm:$0xff] %vm34_vm0, %v1973_v0  ;;  %58 = vst.msk [vmem:[#allocation2 + $0xb8] sm:$0xff] %vm34_vm0, %v1973_v0  ;;  %v141_v35 = vld [vmem:[#allocation3 + $0x150] sm:$0xff]  ;;  %v142_v36 = vld [vmem:[#allocation3 + $0x158] sm:$0xff]  ;;  %v172_v41 = vpack.c.bf16 %v110_v34, %v109_v33 }
  0x1b   :  { %59 = vst.msk [vmem:[#allocation2 + $0xc0] sm:$0xff] %vm34_vm0, %v1973_v0  ;;  %60 = vst.msk [vmem:[#allocation2 + $0xc8] sm:$0xff] %vm34_vm0, %v1973_v0  ;;  %v111_v37 = vld [vmem:[#allocation3 + $0x60] sm:$0xff]  ;;  %v112_v38 = vld [vmem:[#allocation3 + $0x68] sm:$0xff]  ;;  %v188_v42 = vpack.c.bf16 %v142_v36, %v141_v35 }
  0x1c   :  { %61 = vst.msk [vmem:[#allocation2 + $0xd0] sm:$0xff] %vm34_vm0, %v1973_v0  ;;  %62 = vst.msk [vmem:[#allocation2 + $0xd8] sm:$0xff] %vm34_vm0, %v1973_v0  ;;  %v143_v39 = vld [vmem:[#allocation3 + $0x160] sm:$0xff]  ;;  %v144_v40 = vld [vmem:[#allocation3 + $0x168] sm:$0xff]  ;;  %v173_v43 = vpack.c.bf16 %v112_v38, %v111_v37 }
  0x1d   :  { %63 = vst.msk [vmem:[#allocation2 + $0xe0] sm:$0xff] %vm34_vm0, %v1973_v0  ;;  %64 = vst.msk [vmem:[#allocation2 + $0xe8] sm:$0xff] %vm34_vm0, %v1973_v0  ;;  %v189_v44 = vpack.c.bf16 %v144_v40, %v143_v39  ;;  %v113_v45 = vld [vmem:[#allocation3 + $0x70] sm:$0xff]  ;;  %v114_v46 = vld [vmem:[#allocation3 + $0x78] sm:$0xff] }
  0x1e   :  { %65 = vst.msk [vmem:[#allocation2 + $0xf0] sm:$0xff] %vm34_vm0, %v1973_v0  ;;  %66 = vst.msk [vmem:[#allocation2 + $0xf8] sm:$0xff] %vm34_vm0, %v1973_v0  ;;  %v145_v47 = vld [vmem:[#allocation3 + $0x170] sm:$0xff]  ;;  %v146_v48 = vld [vmem:[#allocation3 + $0x178] sm:$0xff]  ;;  %v174_v53 = vpack.c.bf16 %v114_v46, %v113_v45 }
  0x1f   :  { %67 = vst.msk [vmem:[#allocation2 + $0x100] sm:$0xff] %vm34_vm0, %v1973_v0  ;;  %68 = vst.msk [vmem:[#allocation2 + $0x108] sm:$0xff] %vm34_vm0, %v1973_v0  ;;  %1599 = vmatmul.mubr.msk.bf16.gmra.mxu0 %vm275_vm1, %v170_v29  ;;  %1631 = vmatmul.mubr.msk.bf16.gmra.mxu1 %vm275_vm1, %v186_v30  ;;  %v115_v49 = vld [vmem:[#allocation3 + $0x80] sm:$0xff]  ;;  %v116_v50 = vld [vmem:[#allocation3 + $0x88] sm:$0xff]  ;;  %v190_v54 = vpack.c.bf16 %v146_v48, %v145_v47 }
  0x20   :  { %69 = vst.msk [vmem:[#allocation2 + $0x110] sm:$0xff] %vm34_vm0, %v1973_v0  ;;  %70 = vst.msk [vmem:[#allocation2 + $0x118] sm:$0xff] %vm34_vm0, %v1973_v0  ;;  %1602 = vmatprep.mubr.msk.bf16.mxu0 %vm275_vm1, %v171_v31  ;;  %1634 = vmatprep.mubr.msk.bf16.mxu1 %vm275_vm1, %v187_v32  ;;  %v147_v51 = vld [vmem:[#allocation3 + $0x180] sm:$0xff]  ;;  %v148_v52 = vld [vmem:[#allocation3 + $0x188] sm:$0xff]  ;;  %v175_v55 = vpack.c.bf16 %v116_v50, %v115_v49 }
  0x21   :  { %71 = vst.msk [vmem:[#allocation2 + $0x120] sm:$0xff] %vm34_vm0, %v1973_v0  ;;  %72 = vst.msk [vmem:[#allocation2 + $0x128] sm:$0xff] %vm34_vm0, %v1973_v0  ;;  %v191_v56 = vpack.c.bf16 %v148_v52, %v147_v51  ;;  %v117_v57 = vld [vmem:[#allocation3 + $0x90] sm:$0xff]  ;;  %v118_v58 = vld [vmem:[#allocation3 + $0x98] sm:$0xff] }
  0x22   :  { %73 = vst.msk [vmem:[#allocation2 + $0x130] sm:$0xff] %vm34_vm0, %v1973_v0  ;;  %74 = vst.msk [vmem:[#allocation2 + $0x138] sm:$0xff] %vm34_vm0, %v1973_v0  ;;  %v149_v59 = vld [vmem:[#allocation3 + $0x190] sm:$0xff]  ;;  %v150_v60 = vld [vmem:[#allocation3 + $0x198] sm:$0xff]  ;;  %v176_v1 = vpack.c.bf16 %v118_v58, %v117_v57 }
  0x23   :  { %75 = vst.msk [vmem:[#allocation2 + $0x140] sm:$0xff] %vm34_vm0, %v1973_v0  ;;  %76 = vst.msk [vmem:[#allocation2 + $0x148] sm:$0xff] %vm34_vm0, %v1973_v0  ;;  %v119_v61 = vld [vmem:[#allocation3 + $0xa0] sm:$0xff]  ;;  %v120_v62 = vld [vmem:[#allocation3 + $0xa8] sm:$0xff]  ;;  %v192_v2 = vpack.c.bf16 %v150_v60, %v149_v59 }
  0x24   :  { %77 = vst.msk [vmem:[#allocation2 + $0x150] sm:$0xff] %vm34_vm0, %v1973_v0  ;;  %78 = vst.msk [vmem:[#allocation2 + $0x158] sm:$0xff] %vm34_vm0, %v1973_v0  ;;  %v151_v63 = vld [vmem:[#allocation3 + $0x1a0] sm:$0xff]  ;;  %v177_v3 = vpack.c.bf16 %v120_v62, %v119_v61  ;;  %v121_v5 = vld [vmem:[#allocation3 + $0xb0] sm:$0xff] }
  0x25   :  { %79 = vst.msk [vmem:[#allocation2 + $0x160] sm:$0xff] %vm34_vm0, %v1973_v0  ;;  %80 = vst.msk [vmem:[#allocation2 + $0x168] sm:$0xff] %vm34_vm0, %v1973_v0  ;;  %v122_v6 = vld [vmem:[#allocation3 + $0xb8] sm:$0xff]  ;;  %v153_v7 = vld [vmem:[#allocation3 + $0x1b0] sm:$0xff] }
  0x26   :  { %81 = vst.msk [vmem:[#allocation2 + $0x170] sm:$0xff] %vm34_vm0, %v1973_v0  ;;  %82 = vst.msk [vmem:[#allocation2 + $0x178] sm:$0xff] %vm34_vm0, %v1973_v0  ;;  %v154_v8 = vld [vmem:[#allocation3 + $0x1b8] sm:$0xff]  ;;  %v123_v9 = vld [vmem:[#allocation3 + $0xc0] sm:$0xff]  ;;  %v178_v13 = vpack.c.bf16 %v122_v6, %v121_v5 }
  0x27   :  { %83 = vst.msk [vmem:[#allocation2 + $0x180] sm:$0xff] %vm34_vm0, %v1973_v0  ;;  %84 = vst.msk [vmem:[#allocation2 + $0x188] sm:$0xff] %vm34_vm0, %v1973_v0  ;;  %1603 = vmatmul.mubr.msk.bf16.gmra.mxu0 %vm275_vm1, %v172_v41  ;;  %1635 = vmatmul.mubr.msk.bf16.gmra.mxu1 %vm275_vm1, %v188_v42  ;;  %v124_v10 = vld [vmem:[#allocation3 + $0xc8] sm:$0xff]  ;;  %v155_v11 = vld [vmem:[#allocation3 + $0x1c0] sm:$0xff]  ;;  %v194_v14 = vpack.c.bf16 %v154_v8, %v153_v7 }
  0x28   :  { %85 = vst.msk [vmem:[#allocation2 + $0x190] sm:$0xff] %vm34_vm0, %v1973_v0  ;;  %86 = vst.msk [vmem:[#allocation2 + $0x198] sm:$0xff] %vm34_vm0, %v1973_v0  ;;  %1606 = vmatprep.mubr.msk.bf16.mxu0 %vm275_vm1, %v173_v43  ;;  %1638 = vmatprep.mubr.msk.bf16.mxu1 %vm275_vm1, %v189_v44  ;;  %v156_v12 = vld [vmem:[#allocation3 + $0x1c8] sm:$0xff]  ;;  %v179_v15 = vpack.c.bf16 %v124_v10, %v123_v9  ;;  %v125_v17 = vld [vmem:[#allocation3 + $0xd0] sm:$0xff] }
  0x29   :  { %87 = vst.msk [vmem:[#allocation2 + $0x1a0] sm:$0xff] %vm34_vm0, %v1973_v0  ;;  %88 = vst.msk [vmem:[#allocation2 + $0x1a8] sm:$0xff] %vm34_vm0, %v1973_v0  ;;  %v195_v16 = vpack.c.bf16 %v156_v12, %v155_v11  ;;  %v126_v18 = vld [vmem:[#allocation3 + $0xd8] sm:$0xff]  ;;  %v157_v19 = vld [vmem:[#allocation3 + $0x1d0] sm:$0xff] }
  0x2a   :  { %89 = vst.msk [vmem:[#allocation2 + $0x1b0] sm:$0xff] %vm34_vm0, %v1973_v0  ;;  %90 = vst.msk [vmem:[#allocation2 + $0x1b8] sm:$0xff] %vm34_vm0, %v1973_v0  ;;  %v158_v20 = vld [vmem:[#allocation3 + $0x1d8] sm:$0xff]  ;;  %v127_v21 = vld [vmem:[#allocation3 + $0xe0] sm:$0xff]  ;;  %v180_v25 = vpack.c.bf16 %v126_v18, %v125_v17 }
  0x2b   :  { %91 = vst.msk [vmem:[#allocation2 + $0x1c0] sm:$0xff] %vm34_vm0, %v1973_v0  ;;  %92 = vst.msk [vmem:[#allocation2 + $0x1c8] sm:$0xff] %vm34_vm0, %v1973_v0  ;;  %v128_v22 = vld [vmem:[#allocation3 + $0xe8] sm:$0xff]  ;;  %v159_v23 = vld [vmem:[#allocation3 + $0x1e0] sm:$0xff]  ;;  %v196_v26 = vpack.c.bf16 %v158_v20, %v157_v19 }
  0x2c   :  { %93 = vst.msk [vmem:[#allocation2 + $0x1d0] sm:$0xff] %vm34_vm0, %v1973_v0  ;;  %94 = vst.msk [vmem:[#allocation2 + $0x1d8] sm:$0xff] %vm34_vm0, %v1973_v0  ;;  %v160_v24 = vld [vmem:[#allocation3 + $0x1e8] sm:$0xff]  ;;  %v181_v27 = vpack.c.bf16 %v128_v22, %v127_v21  ;;  %v129_v29 = vld [vmem:[#allocation3 + $0xf0] sm:$0xff] }
  0x2d   :  { %95 = vst.msk [vmem:[#allocation2 + $0x1e0] sm:$0xff] %vm34_vm0, %v1973_v0  ;;  %96 = vst.msk [vmem:[#allocation2 + $0x1e8] sm:$0xff] %vm34_vm0, %v1973_v0  ;;  %v197_v28 = vpack.c.bf16 %v160_v24, %v159_v23  ;;  %v130_v30 = vld [vmem:[#allocation3 + $0xf8] sm:$0xff]  ;;  %v161_v31 = vld [vmem:[#allocation3 + $0x1f0] sm:$0xff] }
  0x2e   :  { %97 = vst.msk [vmem:[#allocation2 + $0x1f0] sm:$0xff] %vm34_vm0, %v1973_v0  ;;  %98 = vst.msk [vmem:[#allocation2 + $0x1f8] sm:$0xff] %vm34_vm0, %v1973_v0  ;;  %v152_v0 = vld [vmem:[#allocation3 + $0x1a8] sm:$0xff]  ;;  %v162_v32 = vld [vmem:[#allocation3 + $0x1f8] sm:$0xff]  ;;  %v182_v33 = vpack.c.bf16 %v130_v30, %v129_v29 }
  0x2f   :  { %1607 = vmatmul.mubr.msk.bf16.gmra.mxu0 %vm275_vm1, %v174_v53  ;;  %1639 = vmatmul.mubr.msk.bf16.gmra.mxu1 %vm275_vm1, %v190_v54  ;;  %v193_v4 = vpack.c.bf16 %v152_v0, %v151_v63  ;;  %v198_v34 = vpack.c.bf16 %v162_v32, %v161_v31  ;;  %v201_v35 = vld [vmem:[#allocation2 + $0x10] sm:$0xff]  ;;  %v199_v39 = vld [vmem:[#allocation2] sm:$0xff]  ;;  %v202_v45 = vld [vmem:[#allocation2 + $0x18] sm:$0xff] }
  0x30   :  { %1610 = vmatprep.mubr.msk.bf16.mxu0 %vm275_vm1, %v175_v55  ;;  %1642 = vmatprep.mubr.msk.bf16.mxu1 %vm275_vm1, %v191_v56  ;;  %v233_v36 = vld [vmem:[#allocation2 + $0x110] sm:$0xff]  ;;  %v231_v40 = vld [vmem:[#allocation2 + $0x100] sm:$0xff]  ;;  %v234_v46 = vld [vmem:[#allocation2 + $0x118] sm:$0xff] }
  0x31   :  { %v200_v51 = vld [vmem:[#allocation2 + $0x8] sm:$0xff]  ;;  %v205_v57 = vld [vmem:[#allocation2 + $0x30] sm:$0xff]  ;;  %v2176_v61 = vld [vmem:[%s2747_s2] ss:$0 sm:$0xff] }
  0x32   :  { %v232_v52 = vld [vmem:[#allocation2 + $0x108] sm:$0xff]  ;;  %v237_v58 = vld [vmem:[#allocation2 + $0x130] sm:$0xff]  ;;  %v203_v0 = vld [vmem:[#allocation2 + $0x20] sm:$0xff] }
  0x33   :  { %v206_v12 = vld [vmem:[#allocation2 + $0x38] sm:$0xff]  ;;  %v204_v22 = vld [vmem:[#allocation2 + $0x28] sm:$0xff] }
  0x34   :  { %v236_v23 = vld [vmem:[#allocation2 + $0x128] sm:$0xff] }
  0x37   :  { %1611 = vmatmul.mubr.msk.bf16.gmra.mxu0 %vm275_vm1, %v176_v1  ;;  %1643 = vmatmul.mubr.msk.bf16.gmra.mxu1 %vm275_vm1, %v192_v2  ;;  %v235_v1 = vld [vmem:[#allocation2 + $0x120] sm:$0xff] }
  0x38   :  { %1614 = vmatprep.mubr.msk.bf16.mxu0 %vm275_vm1, %v177_v3  ;;  %1646 = vmatprep.mubr.msk.bf16.mxu1 %vm275_vm1, %v193_v4 }
  0x3f   :  { %1615 = vmatmul.mubr.msk.bf16.gmra.mxu0 %vm275_vm1, %v178_v13  ;;  %1647 = vmatmul.mubr.msk.bf16.gmra.mxu1 %vm275_vm1, %v194_v14  ;;  %v238_v13 = vld [vmem:[#allocation2 + $0x138] sm:$0xff] }
  0x40   :  { %1618 = vmatprep.mubr.msk.bf16.mxu0 %vm275_vm1, %v179_v15  ;;  %1650 = vmatprep.mubr.msk.bf16.mxu1 %vm275_vm1, %v195_v16 }
  0x47   :  { %1619 = vmatmul.mubr.msk.bf16.gmra.mxu0 %vm275_vm1, %v180_v25  ;;  %1651 = vmatmul.mubr.msk.bf16.gmra.mxu1 %vm275_vm1, %v196_v26 }
  0x48   :  { %1622 = vmatprep.mubr.msk.bf16.mxu0 %vm275_vm1, %v181_v27  ;;  %1654 = vmatprep.mubr.msk.bf16.mxu1 %vm275_vm1, %v197_v28 }
  0x4f   :  { %1623 = vmatmul.mubr.msk.bf16.gmra.mxu0 %vm275_vm1, %v182_v33  ;;  %1655 = vmatmul.mubr.msk.bf16.gmra.mxu1 %vm275_vm1, %v198_v34  ;;  %v209_v33 = vld [vmem:[#allocation2 + $0x50] sm:$0xff] }
  0x50   :  { %v241_v34 = vld [vmem:[#allocation2 + $0x150] sm:$0xff] }
  0xd7   :  { %v1596_v37 = vpop.f32.mrf.mxu0  ;;  %v1628_v38 = vpop.f32.mrf.mxu1 }
  0xd8   :  { %v663_v41 = vadd.f32 %v1596_v37, %v201_v35  ;;  %v695_v42 = vadd.f32 %v1628_v38, %v233_v36 }
  0xd9   :  { %v406_v43 = vpop.f32.mrf.mxu0  ;;  %v534_v44 = vpop.f32.mrf.mxu1 }
  0xda   :  { %728 = vst.msk [vmem:[#allocation2 + $0x10] sm:$0xff] %vm34_vm0, %v663_v41  ;;  %760 = vst.msk [vmem:[#allocation2 + $0x110] sm:$0xff] %vm34_vm0, %v695_v42  ;;  %v661_v47 = vadd.f32 %v406_v43, %v199_v39  ;;  %v693_v48 = vadd.f32 %v534_v44, %v231_v40 }
  0xdb   :  { %v1597_v49 = vpop.f32.mrf.mxu0  ;;  %v1629_v50 = vpop.f32.mrf.mxu1 }
  0xdc   :  { %726 = vst.msk [vmem:[#allocation2] sm:$0xff] %vm34_vm0, %v661_v47  ;;  %758 = vst.msk [vmem:[#allocation2 + $0x100] sm:$0xff] %vm34_vm0, %v693_v48  ;;  %v664_v53 = vadd.f32 %v1597_v49, %v202_v45  ;;  %v696_v54 = vadd.f32 %v1629_v50, %v234_v46  ;;  %v207_v45 = vld [vmem:[#allocation2 + $0x40] sm:$0xff] }
  0xdd   :  { %v409_v55 = vpop.f32.mrf.mxu0  ;;  %v537_v56 = vpop.f32.mrf.mxu1  ;;  %v239_v46 = vld [vmem:[#allocation2 + $0x140] sm:$0xff] }
  0xde   :  { %729 = vst.msk [vmem:[#allocation2 + $0x18] sm:$0xff] %vm34_vm0, %v664_v53  ;;  %761 = vst.msk [vmem:[#allocation2 + $0x118] sm:$0xff] %vm34_vm0, %v696_v54  ;;  %v662_v59 = vadd.f32 %v409_v55, %v200_v51  ;;  %v694_v60 = vadd.f32 %v537_v56, %v232_v52 }
  0xdf   :  { %v1600_v62 = vpop.f32.mrf.mxu0  ;;  %v1632_v63 = vpop.f32.mrf.mxu1 }
  0xe0   :  { %727 = vst.msk [vmem:[#allocation2 + $0x8] sm:$0xff] %vm34_vm0, %v662_v59  ;;  %759 = vst.msk [vmem:[#allocation2 + $0x108] sm:$0xff] %vm34_vm0, %v694_v60  ;;  %v667_v2 = vadd.f32 %v1600_v62, %v205_v57  ;;  %v699_v3 = vadd.f32 %v1632_v63, %v237_v58  ;;  %v210_v57 = vld [vmem:[#allocation2 + $0x58] sm:$0xff] }
  0xe1   :  { %v795_v4 = vld [vmem:[#allocation2 + $0x10] sm:$0xff]  ;;  %v422_v6 = vpop.f32.mrf.mxu0  ;;  %v550_v7 = vpop.f32.mrf.mxu1  ;;  %v242_v58 = vld [vmem:[#allocation2 + $0x158] sm:$0xff] }
  0xe2   :  { %v827_v5 = vld [vmem:[#allocation2 + $0x110] sm:$0xff]  ;;  %v2181_v8 = vadd.f32 %v2176_v61, %v795_v4  ;;  %732 = vst.msk [vmem:[#allocation2 + $0x30] sm:$0xff] %vm34_vm0, %v667_v2  ;;  %764 = vst.msk [vmem:[#allocation2 + $0x130] sm:$0xff] %vm34_vm0, %v699_v3  ;;  %v665_v10 = vadd.f32 %v422_v6, %v203_v0  ;;  %v697_v11 = vadd.f32 %v550_v7, %v235_v1  ;;  %v208_v3 = vld [vmem:[#allocation2 + $0x48] sm:$0xff] }
  0xe3   :  { %v2184_v9 = vadd.f32 %v2176_v61, %v827_v5  ;;  %v793_v14 = vld [vmem:[#allocation2] sm:$0xff]  ;;  %v1601_v16 = vpop.f32.mrf.mxu0  ;;  %v1633_v17 = vpop.f32.mrf.mxu1  ;;  %v240_v7 = vld [vmem:[#allocation2 + $0x148] sm:$0xff] }
  0xe4   :  { %v825_v15 = vld [vmem:[#allocation2 + $0x100] sm:$0xff]  ;;  %v1494_v18 = vmul.f32 -1.442695, %v2181_v8  ;;  %v2191_v20 = vadd.f32 %v2176_v61, %v793_v14  ;;  %730 = vst.msk [vmem:[#allocation2 + $0x20] sm:$0xff] %vm34_vm0, %v665_v10  ;;  %762 = vst.msk [vmem:[#allocation2 + $0x120] sm:$0xff] %vm34_vm0, %v697_v11  ;;  %v668_v26 = vadd.f32 %v1601_v16, %v206_v12  ;;  %v700_v27 = vadd.f32 %v1633_v17, %v238_v13  ;;  %v245_v16 = vld [vmem:[#allocation2 + $0x170] sm:$0xff] }
  0xe5   :  { %v1526_v19 = vmul.f32 -1.442695, %v2184_v9  ;;  %v2194_v21 = vadd.f32 %v2176_v61, %v825_v15  ;;  %v796_v24 = vld [vmem:[#allocation2 + $0x18] sm:$0xff]  ;;  %v425_v28 = vpop.f32.mrf.mxu0  ;;  %v553_v29 = vpop.f32.mrf.mxu1  ;;  %v213_v15 = vld [vmem:[#allocation2 + $0x70] sm:$0xff] }
  0xe6   :  { %v828_v25 = vld [vmem:[#allocation2 + $0x118] sm:$0xff]  ;;  %1669 = vpow2.f32 %v1494_v18  ;;  %v1492_v30 = vmul.f32 -1.442695, %v2191_v20  ;;  %v2201_v32 = vadd.f32 %v2176_v61, %v796_v24  ;;  %733 = vst.msk [vmem:[#allocation2 + $0x38] sm:$0xff] %vm34_vm0, %v668_v26  ;;  %765 = vst.msk [vmem:[#allocation2 + $0x138] sm:$0xff] %vm34_vm0, %v700_v27  ;;  %v666_v38 = vadd.f32 %v425_v28, %v204_v22 }
  0xe7   :  { %v1524_v31 = vmul.f32 -1.442695, %v2194_v21  ;;  %1671 = vpow2.f32 %v1526_v19  ;;  %v2204_v35 = vadd.f32 %v2176_v61, %v828_v25  ;;  %v794_v36 = vld [vmem:[#allocation2 + $0x8] sm:$0xff]  ;;  %v698_v39 = vadd.f32 %v553_v29, %v236_v23  ;;  %v1604_v40 = vpop.f32.mrf.mxu0  ;;  %v1636_v41 = vpop.f32.mrf.mxu1  ;;  %v211_v29 = vld [vmem:[#allocation2 + $0x60] sm:$0xff] }
  0xe8   :  { %v826_v37 = vld [vmem:[#allocation2 + $0x108] sm:$0xff]  ;;  %1673 = vpow2.f32 %v1492_v30  ;;  %v1495_v42 = vmul.f32 -1.442695, %v2201_v32  ;;  %v2210_v43 = vadd.f32 %v2176_v61, %v794_v36  ;;  %731 = vst.msk [vmem:[#allocation2 + $0x28] sm:$0xff] %vm34_vm0, %v666_v38  ;;  %v671_v50 = vadd.f32 %v1604_v40, %v209_v33  ;;  %v243_v30 = vld [vmem:[#allocation2 + $0x160] sm:$0xff] }
  0xe9   :  { %v2213_v44 = vadd.f32 %v2176_v61, %v826_v37  ;;  %1675 = vpow2.f32 %v1524_v31  ;;  %v1527_v47 = vmul.f32 -1.442695, %v2204_v35  ;;  %v799_v48 = vld [vmem:[#allocation2 + $0x30] sm:$0xff]  ;;  %763 = vst.msk [vmem:[#allocation2 + $0x128] sm:$0xff] %vm34_vm0, %v698_v39  ;;  %v703_v51 = vadd.f32 %v1636_v41, %v241_v34  ;;  %v438_v52 = vpop.f32.mrf.mxu0  ;;  %v566_v53 = vpop.f32.mrf.mxu1 }
  0xea   :  { %v831_v49 = vld [vmem:[#allocation2 + $0x130] sm:$0xff]  ;;  %1677 = vpow2.f32 %v1495_v42  ;;  %v1493_v54 = vmul.f32 -1.442695, %v2210_v43  ;;  %v2221_v56 = vadd.f32 %v2176_v61, %v799_v48  ;;  %736 = vst.msk [vmem:[#allocation2 + $0x50] sm:$0xff] %vm34_vm0, %v671_v50  ;;  %v669_v63 = vadd.f32 %v438_v52, %v207_v45  ;;  %v214_v42 = vld [vmem:[#allocation2 + $0x78] sm:$0xff] }
  0xeb   :  { %v1525_v55 = vmul.f32 -1.442695, %v2213_v44  ;;  %1679 = vpow2.f32 %v1527_v47  ;;  %v2224_v59 = vadd.f32 %v2176_v61, %v831_v49  ;;  %v797_v60 = vld [vmem:[#allocation2 + $0x20] sm:$0xff]  ;;  %768 = vst.msk [vmem:[#allocation2 + $0x150] sm:$0xff] %vm34_vm0, %v703_v51  ;;  %v701_v0 = vadd.f32 %v566_v53, %v239_v46  ;;  %v1605_v1 = vpop.f32.mrf.mxu0  ;;  %v1637_v2 = vpop.f32.mrf.mxu1 }
  0xec   :  { %v829_v62 = vld [vmem:[#allocation2 + $0x120] sm:$0xff]  ;;  %1681 = vpow2.f32 %v1493_v54  ;;  %v1498_v4 = vmul.f32 -1.442695, %v2221_v56  ;;  %v2230_v5 = vadd.f32 %v2176_v61, %v797_v60  ;;  %734 = vst.msk [vmem:[#allocation2 + $0x40] sm:$0xff] %vm34_vm0, %v669_v63  ;;  %v672_v11 = vadd.f32 %v1605_v1, %v210_v57 }
  0xed   :  { %v2233_v6 = vadd.f32 %v2176_v61, %v829_v62  ;;  %1683 = vpow2.f32 %v1525_v55  ;;  %v1530_v10 = vmul.f32 -1.442695, %v2224_v59  ;;  %766 = vst.msk [vmem:[#allocation2 + $0x140] sm:$0xff] %vm34_vm0, %v701_v0  ;;  %v704_v12 = vadd.f32 %v1637_v2, %v242_v58  ;;  %v441_v13 = vpop.f32.mrf.mxu0  ;;  %v569_v14 = vpop.f32.mrf.mxu1  ;;  %v800_v19 = vld [vmem:[#allocation2 + $0x38] sm:$0xff] }
  0xee   :  { %1685 = vpow2.f32 %v1498_v4  ;;  %v1496_v17 = vmul.f32 -1.442695, %v2230_v5  ;;  %v832_v22 = vld [vmem:[#allocation2 + $0x138] sm:$0xff]  ;;  %v670_v23 = vadd.f32 %v441_v13, %v208_v3  ;;  %v2241_v24 = vadd.f32 %v2176_v61, %v800_v19  ;;  %737 = vst.msk [vmem:[#allocation2 + $0x58] sm:$0xff] %vm34_vm0, %v672_v11 }
  0xef   :  { %v1528_v18 = vmul.f32 -1.442695, %v2233_v6  ;;  %1687 = vpow2.f32 %v1530_v10  ;;  %v2244_v25 = vadd.f32 %v2176_v61, %v832_v22  ;;  %769 = vst.msk [vmem:[#allocation2 + $0x158] sm:$0xff] %vm34_vm0, %v704_v12  ;;  %v702_v26 = vadd.f32 %v569_v14, %v240_v7  ;;  %v1608_v27 = vpop.f32.mrf.mxu0  ;;  %v1640_v28 = vpop.f32.mrf.mxu1  ;;  %v798_v31 = vld [vmem:[#allocation2 + $0x28] sm:$0xff] }
  0xf0   :  { %1689 = vpow2.f32 %v1496_v17  ;;  %735 = vst.msk [vmem:[#allocation2 + $0x48] sm:$0xff] %vm34_vm0, %v670_v23  ;;  %v675_v33 = vadd.f32 %v1608_v27, %v213_v15  ;;  %v707_v34 = vadd.f32 %v1640_v28, %v245_v16  ;;  %v1499_v36 = vmul.f32 -1.442695, %v2241_v24  ;;  %v830_v39 = vld [vmem:[#allocation2 + $0x128] sm:$0xff] }
  0xf1   :  { %1691 = vpow2.f32 %v1528_v18  ;;  %v1531_v37 = vmul.f32 -1.442695, %v2244_v25  ;;  %v2252_v38 = vadd.f32 %v2176_v61, %v798_v31  ;;  %767 = vst.msk [vmem:[#allocation2 + $0x148] sm:$0xff] %vm34_vm0, %v702_v26  ;;  %v454_v40 = vpop.f32.mrf.mxu0  ;;  %v582_v41 = vpop.f32.mrf.mxu1  ;;  %v803_v49 = vld [vmem:[#allocation2 + $0x50] sm:$0xff]  ;;  %v2261_v54 = vadd.f32 %v2176_v61, %v830_v39 }
  0xf2   :  { %740 = vst.msk [vmem:[#allocation2 + $0x70] sm:$0xff] %vm34_vm0, %v675_v33  ;;  %772 = vst.msk [vmem:[#allocation2 + $0x170] sm:$0xff] %vm34_vm0, %v707_v34  ;;  %v673_v45 = vadd.f32 %v454_v40, %v211_v29  ;;  %v705_v46 = vadd.f32 %v582_v41, %v243_v30  ;;  %1693 = vpow2.f32 %v1499_v36  ;;  %v835_v55 = vld [vmem:[#allocation2 + $0x150] sm:$0xff]  ;;  %v2270_v3 = vadd.f32 %v2176_v61, %v803_v49 }
  0xf3   :  { %v1670_v47 = vpop.eup %1669  ;;  %v1497_v48 = vmul.f32 -1.442695, %v2252_v38  ;;  %v1609_v50 = vpop.f32.mrf.mxu0  ;;  %1695 = vpow2.f32 %v1531_v37  ;;  %v801_v57 = vld [vmem:[#allocation2 + $0x40] sm:$0xff]  ;;  %v2274_v12 = vadd.f32 %v2176_v61, %v835_v55  ;;  %v2284_v19 = vmul.f32 -1.442695, %v2261_v54  ;;  %v246_v55 = vld [vmem:[#allocation2 + $0x178] sm:$0xff] }
  0xf4   :  { %v2258_v51 = vpop.f32.mrf.mxu1  ;;  %v1672_v52 = vpop.eup %1671  ;;  %v1122_v53 = vadd.f32 1.0, %v1670_v47  ;;  %738 = vst.msk [vmem:[#allocation2 + $0x60] sm:$0xff] %vm34_vm0, %v673_v45  ;;  %770 = vst.msk [vmem:[#allocation2 + $0x160] sm:$0xff] %vm34_vm0, %v705_v46  ;;  %v676_v58 = vadd.f32 %v1609_v50, %v214_v42  ;;  %v833_v4 = vld [vmem:[#allocation2 + $0x140] sm:$0xff]  ;;  %v2277_v13 = vadd.f32 %v2176_v61, %v801_v57  ;;  %v2297_v36 = vmul.f32 -1.442695, %v2270_v3 }
  0xf5   :  { %v1674_v60 = vpop.eup %1673  ;;  %v1154_v62 = vadd.f32 1.0, %v1672_v52  ;;  %1697 = vpow2.f32 %v1497_v48  ;;  %v2265_v63 = vpop.f32.mrf.mxu0  ;;  %v804_v7 = vld [vmem:[#allocation2 + $0x58] sm:$0xff]  ;;  %2756 = vst [vmem:[#allocation9_spill] sm:$0xff] %v2274_v12  ;;  %v2287_v26 = vadd.f32 %v2176_v61, %v833_v4  ;;  %v2303_v41 = vmul.f32 -1.442695, %v2274_v12 }
  0xf6   :  { %v2267_v0 = vpop.f32.mrf.mxu1  ;;  %v1676_v1 = vpop.eup %1675  ;;  %1699 = vrcp.f32 %v1122_v53  ;;  %v1120_v2 = vadd.f32 1.0, %v1674_v60  ;;  %741 = vst.msk [vmem:[#allocation2 + $0x78] sm:$0xff] %vm34_vm0, %v676_v58  ;;  %2757 = vst [vmem:[#allocation10_spill] sm:$0xff] %v2277_v13  ;;  %v836_v14 = vld [vmem:[#allocation2 + $0x158] sm:$0xff]  ;;  %v2290_v27 = vadd.f32 %v2176_v61, %v804_v7  ;;  %v2306_v42 = vmul.f32 -1.442695, %v2277_v13 }
  0xf7   :  { %v1678_v10 = vpop.eup %1677  ;;  %1701 = vrcp.f32 %v1154_v62  ;;  %v1152_v11 = vadd.f32 1.0, %v1676_v1  ;;  %v2279_v15 = vpop.f32.mrf.mxu0  ;;  %2758 = vst [vmem:[#allocation11_spill] sm:$0xff] %v2287_v26  ;;  %v802_v28 = vld [vmem:[#allocation2 + $0x48] sm:$0xff]  ;;  %v2300_v37 = vadd.f32 %v2176_v61, %v836_v14  ;;  %v2319_v60 = vmul.f32 -1.442695, %v2287_v26  ;;  %v253_v13 = vld [vmem:[#allocation2 + $0x1b0] sm:$0xff] }
  0xf8   :  { %v2281_v16 = vpop.f32.mrf.mxu1  ;;  %v1680_v17 = vpop.eup %1679  ;;  %1703 = vrcp.f32 %v1120_v2  ;;  %v1123_v18 = vadd.f32 1.0, %v1678_v10  ;;  %2759 = vst [vmem:[#allocation12_spill] sm:$0xff] %v2290_v27  ;;  %v834_v29 = vld [vmem:[#allocation2 + $0x148] sm:$0xff]  ;;  %v2313_v50 = vadd.f32 %v2176_v61, %v802_v28  ;;  %v2322_v62 = vmul.f32 -1.442695, %v2290_v27 }
  0xf9   :  { %v1682_v22 = vpop.eup %1681  ;;  %1705 = vrcp.f32 %v1152_v11  ;;  %v1155_v23 = vadd.f32 1.0, %v1680_v17  ;;  %v2292_v30 = vpop.f32.mrf.mxu0  ;;  %2760 = vst [vmem:[#allocation13_spill] sm:$0xff] %v2300_v37  ;;  %v807_v45 = vld [vmem:[#allocation2 + $0x70] sm:$0xff]  ;;  %v2316_v52 = vadd.f32 %v2176_v61, %v834_v29  ;;  %v212_v1 = vld [vmem:[#allocation2 + $0x68] sm:$0xff]  ;;  %v2329_v11 = vmul.f32 -1.442695, %v2300_v37 }
  0xfa   :  { %v2294_v31 = vpop.f32.mrf.mxu1  ;;  %v1684_v33 = vpop.eup %1683  ;;  %1707 = vrcp.f32 %v1123_v18  ;;  %v1121_v34 = vadd.f32 1.0, %v1682_v22  ;;  %2761 = vst [vmem:[#allocation14_spill] sm:$0xff] %v2313_v50  ;;  %v839_v53 = vld [vmem:[#allocation2 + $0x170] sm:$0xff]  ;;  %v2332_v14 = vadd.f32 %v2176_v61, %v807_v45  ;;  %v244_v18 = vld [vmem:[#allocation2 + $0x168] sm:$0xff]  ;;  %v708_v28 = vadd.f32 %v2258_v51, %v246_v55 }
  0xfb   :  { %v1686_v39 = vpop.eup %1685  ;;  %1709 = vrcp.f32 %v1155_v23  ;;  %v1153_v40 = vadd.f32 1.0, %v1684_v33  ;;  %v2308_v46 = vpop.f32.mrf.mxu0  ;;  %2762 = vst [vmem:[#allocation15_spill] sm:$0xff] %v2316_v52  ;;  %v805_v17 = vld [vmem:[#allocation2 + $0x60] sm:$0xff]  ;;  %v2335_v23 = vadd.f32 %v2176_v61, %v839_v53  ;;  %v217_v29 = vld [vmem:[#allocation2 + $0x90] sm:$0xff]  ;;  %v2343_v45 = vmul.f32 -1.442695, %v2313_v50 }
  0xfc   :  { %v2310_v47 = vpop.f32.mrf.mxu1  ;;  %v1688_v48 = vpop.eup %1687  ;;  %1711 = vrcp.f32 %v1121_v34  ;;  %v1126_v49 = vadd.f32 1.0, %v1686_v39  ;;  %v249_v33 = vld [vmem:[#allocation2 + $0x190] sm:$0xff]  ;;  %v215_v53 = vld [vmem:[#allocation2 + $0x80] sm:$0xff]  ;;  %v2350_v55 = vadd.f32 %v2176_v61, %v805_v17  ;;  %773 = vst.msk [vmem:[#allocation2 + $0x178] sm:$0xff] %vm34_vm0, %v708_v28  ;;  %v250_v50 = vld [vmem:[#allocation2 + $0x198] sm:$0xff] }
  0xfd   :  { %v1690_v57 = vpop.eup %1689  ;;  %1713 = vrcp.f32 %v1153_v40  ;;  %v1158_v58 = vadd.f32 1.0, %v1688_v48  ;;  %v2324_v2 = vpop.f32.mrf.mxu0  ;;  %v2346_v48 = vmul.f32 -1.442695, %v2316_v52  ;;  %v216_v17 = vld [vmem:[#allocation2 + $0x88] sm:$0xff] }
  0xfe   :  { %v2326_v4 = vpop.f32.mrf.mxu1  ;;  %v1692_v7 = vpop.eup %1691  ;;  %1715 = vrcp.f32 %v1126_v49  ;;  %v1124_v10 = vadd.f32 1.0, %v1690_v57  ;;  %v674_v49 = vadd.f32 %v2265_v63, %v212_v1  ;;  %v247_v57 = vld [vmem:[#allocation2 + $0x180] sm:$0xff]  ;;  %v679_v63 = vadd.f32 %v2279_v15, %v217_v29 }
  0xff   :  { %1717 = vrcp.f32 %v1158_v58  ;;  %v1156_v22 = vadd.f32 1.0, %v1692_v7  ;;  %v2338_v34 = vpop.f32.mrf.mxu0  ;;  %v1694_v40 = vpop.eup %1693  ;;  %v706_v7 = vadd.f32 %v2267_v0, %v244_v18  ;;  %v711_v1 = vadd.f32 %v2281_v16, %v249_v33  ;;  %v219_v29 = vld [vmem:[#allocation2 + $0xa0] sm:$0xff] }
 0x100   :  { %v2340_v39 = vpop.f32.mrf.mxu1  ;;  %1719 = vrcp.f32 %v1124_v10  ;;  %v1696_v58 = vpop.eup %1695  ;;  %v1127_v51 = vadd.f32 1.0, %v1694_v40  ;;  %v218_v10 = vld [vmem:[#allocation2 + $0x98] sm:$0xff]  ;;  %739 = vst.msk [vmem:[#allocation2 + $0x68] sm:$0xff] %vm34_vm0, %v674_v49  ;;  %v677_v0 = vadd.f32 %v2292_v30, %v215_v53  ;;  %v709_v18 = vadd.f32 %v2294_v31, %v247_v57  ;;  %744 = vst.msk [vmem:[#allocation2 + $0x90] sm:$0xff] %vm34_vm0, %v679_v63  ;;  %v251_v30 = vld [vmem:[#allocation2 + $0x1a0] sm:$0xff] }
 0x101   :  { %1721 = vrcp.f32 %v1156_v22  ;;  %v486_v37 = vpop.f32.mrf.mxu0  ;;  %v1159_v26 = vadd.f32 1.0, %v1696_v58  ;;  %v248_v22 = vld [vmem:[#allocation2 + $0x188] sm:$0xff]  ;;  %771 = vst.msk [vmem:[#allocation2 + $0x168] sm:$0xff] %vm34_vm0, %v706_v7  ;;  %v221_v58 = vld [vmem:[#allocation2 + $0xb0] sm:$0xff]  ;;  %776 = vst.msk [vmem:[#allocation2 + $0x190] sm:$0xff] %vm34_vm0, %v711_v1  ;;  %v680_v16 = vadd.f32 %v2308_v46, %v218_v10 }
 0x102   :  { %v614_v27 = vpop.f32.mrf.mxu1  ;;  %v1698_v52 = vpop.eup %1697  ;;  %1723 = vpow2.f32 %v2284_v19  ;;  %742 = vst.msk [vmem:[#allocation2 + $0x80] sm:$0xff] %vm34_vm0, %v677_v0  ;;  %774 = vst.msk [vmem:[#allocation2 + $0x180] sm:$0xff] %vm34_vm0, %v709_v18  ;;  %v222_v53 = vld [vmem:[#allocation2 + $0xb8] sm:$0xff]  ;;  %v252_v1 = vld [vmem:[#allocation2 + $0x1a8] sm:$0xff] }
 0x103   :  { %v1700_v40 = vpop.eup %1699  ;;  %1725 = vrcp.f32 %v1127_v51  ;;  %v1125_v28 = vadd.f32 1.0, %v1698_v52  ;;  %v1617_v19 = vpop.f32.mrf.mxu0  ;;  %v712_v52 = vadd.f32 %v2310_v47, %v250_v50  ;;  %v254_v57 = vld [vmem:[#allocation2 + $0x1b8] sm:$0xff]  ;;  %745 = vst.msk [vmem:[#allocation2 + $0x98] sm:$0xff] %vm34_vm0, %v680_v16  ;;  %v683_v50 = vadd.f32 %v2338_v34, %v221_v58 }
 0x104   :  { %v1649_v12 = vpop.f32.mrf.mxu1  ;;  %v1702_v49 = vpop.eup %1701  ;;  %v1314_v15 = vmul.f32 %v1700_v40, %v2181_v8  ;;  %1727 = vrcp.f32 %v1159_v26  ;;  %v678_v8 = vadd.f32 %v2324_v2, %v216_v17  ;;  %v710_v26 = vadd.f32 %v2326_v4, %v248_v22  ;;  %v220_v4 = vld [vmem:[#allocation2 + $0xa8] sm:$0xff] }
 0x105   :  { %v1704_v33 = vpop.eup %1703  ;;  %v1346_v31 = vmul.f32 %v1702_v49, %v2184_v9  ;;  %1729 = vrcp.f32 %v1125_v28  ;;  %v489_v51 = vpop.f32.mrf.mxu0  ;;  %v837_v9 = vld [vmem:[#allocation2 + $0x160] sm:$0xff]  ;;  %777 = vst.msk [vmem:[#allocation2 + $0x198] sm:$0xff] %vm34_vm0, %v712_v52  ;;  %v715_v2 = vadd.f32 %v2340_v39, %v253_v13  ;;  %748 = vst.msk [vmem:[#allocation2 + $0xb0] sm:$0xff] %vm34_vm0, %v683_v50  ;;  %v1504_v52 = vmul.f32 -1.442695, %v2350_v55 }
 0x106   :  { %v617_v46 = vpop.f32.mrf.mxu1  ;;  %v1706_v7 = vpop.eup %1705  ;;  %1378 = vst.msk [vmem:[#allocation6 + $0x10] sm:$0xff] %vm34_vm0, %v1314_v15  ;;  %v1312_v47 = vmul.f32 %v1704_v33, %v2191_v20  ;;  %1731 = vpow2.f32 %v2297_v36  ;;  %743 = vst.msk [vmem:[#allocation2 + $0x88] sm:$0xff] %vm34_vm0, %v678_v8  ;;  %v681_v20 = vadd.f32 %v486_v37, %v219_v29  ;;  %v713_v36 = vadd.f32 %v614_v27, %v251_v30 }
 0x107   :  { %v1708_v10 = vpop.eup %1707  ;;  %1410 = vst.msk [vmem:[#allocation6 + $0x110] sm:$0xff] %vm34_vm0, %v1346_v31  ;;  %v1344_v63 = vmul.f32 %v1706_v7, %v2194_v21  ;;  %1733 = vpow2.f32 %v2303_v41  ;;  %775 = vst.msk [vmem:[#allocation2 + $0x188] sm:$0xff] %vm34_vm0, %v710_v26  ;;  %v2383_v17 = vpop.f32.mrf.mxu0  ;;  %v808_v21 = vld [vmem:[#allocation2 + $0x78] sm:$0xff]  ;;  %v684_v41 = vadd.f32 %v1617_v19, %v222_v53  ;;  %v716_v37 = vadd.f32 %v1649_v12, %v254_v57  ;;  %v806_v18 = vld [vmem:[#allocation2 + $0x68] sm:$0xff] }
 0x108   :  { %v2385_v34 = vpop.f32.mrf.mxu1  ;;  %v1710_v13 = vpop.eup %1709  ;;  %1376 = vst.msk [vmem:[#allocation6] sm:$0xff] %vm34_vm0, %v1312_v47  ;;  %v1315_v39 = vmul.f32 %v1708_v10, %v2201_v32  ;;  %1735 = vpow2.f32 %v2306_v42  ;;  %780 = vst.msk [vmem:[#allocation2 + $0x1b0] sm:$0xff] %vm34_vm0, %v715_v2  ;;  %v2396_v40 = vadd.f32 %v2176_v61, %v837_v9  ;;  %v840_v32 = vld [vmem:[#allocation2 + $0x178] sm:$0xff]  ;;  %v682_v42 = vadd.f32 %v489_v51, %v220_v4  ;;  %v838_v2 = vld [vmem:[#allocation2 + $0x168] sm:$0xff] }
 0x109   :  { %v1712_v27 = vpop.eup %1711  ;;  %1408 = vst.msk [vmem:[#allocation6 + $0x100] sm:$0xff] %vm34_vm0, %v1344_v63  ;;  %v1347_v22 = vmul.f32 %v1710_v13, %v2204_v35  ;;  %1737 = vpow2.f32 %v2319_v60  ;;  %746 = vst.msk [vmem:[#allocation2 + $0xa0] sm:$0xff] %vm34_vm0, %v681_v20  ;;  %v2400_v28 = vpop.f32.mrf.mxu0  ;;  %v1506_v60 = vmul.f32 -1.442695, %v2332_v14  ;;  %v714_v58 = vadd.f32 %v617_v46, %v252_v1  ;;  %v811_v4 = vld [vmem:[#allocation2 + $0x90] sm:$0xff]  ;;  %v809_v1 = vld [vmem:[#allocation2 + $0x80] sm:$0xff] }
 0x10a   :  { %778 = vst.msk [vmem:[#allocation2 + $0x1a0] sm:$0xff] %vm34_vm0, %v713_v36  ;;  %v2402_v0 = vpop.f32.mrf.mxu1  ;;  %v1714_v12 = vpop.eup %1713  ;;  %1379 = vst.msk [vmem:[#allocation6 + $0x18] sm:$0xff] %vm34_vm0, %v1315_v39  ;;  %v1313_v35 = vmul.f32 %v1712_v27, %v2210_v43  ;;  %1739 = vpow2.f32 %v2322_v62  ;;  %v1538_v15 = vmul.f32 -1.442695, %v2335_v23  ;;  %v2415_v43 = vadd.f32 %v2176_v61, %v808_v21 }
 0x10b   :  { %749 = vst.msk [vmem:[#allocation2 + $0xb8] sm:$0xff] %vm34_vm0, %v684_v41  ;;  %781 = vst.msk [vmem:[#allocation2 + $0x1b8] sm:$0xff] %vm34_vm0, %v716_v37  ;;  %v1716_v19 = vpop.eup %1715  ;;  %v1345_v49 = vmul.f32 %v1714_v12, %v2213_v44  ;;  %1741 = vpow2.f32 %v2329_v11  ;;  %v2423_v44 = vadd.f32 %v2176_v61, %v840_v32  ;;  %v1536_v30 = vmul.f32 -1.442695, %v2396_v40 }
 0x10c   :  { %1411 = vst.msk [vmem:[#allocation6 + $0x118] sm:$0xff] %vm34_vm0, %v1347_v22  ;;  %747 = vst.msk [vmem:[#allocation2 + $0xa8] sm:$0xff] %vm34_vm0, %v682_v42  ;;  %v1718_v62 = vpop.eup %1717  ;;  %v1318_v16 = vmul.f32 %v1716_v19, %v2221_v56  ;;  %1743 = vpow2.f32 %v2343_v45  ;;  %v2431_v56 = vadd.f32 %v2176_v61, %v806_v18  ;;  %v2433_v45 = vpop.f32.mrf.mxu0  ;;  %v2457_v39 = vadd.f32 %v2176_v61, %v838_v2  ;;  %v225_v19 = vld [vmem:[#allocation2 + $0xd0] sm:$0xff] }
 0x10d   :  { %1377 = vst.msk [vmem:[#allocation6 + $0x8] sm:$0xff] %vm34_vm0, %v1313_v35  ;;  %779 = vst.msk [vmem:[#allocation2 + $0x1a8] sm:$0xff] %vm34_vm0, %v714_v58  ;;  %v1720_v11 = vpop.eup %1719  ;;  %v1350_v29 = vmul.f32 %v1718_v62, %v2224_v59  ;;  %1745 = vpow2.f32 %v2346_v48  ;;  %v2435_v33 = vpop.f32.mrf.mxu1  ;;  %v1507_v48 = vmul.f32 -1.442695, %v2415_v43  ;;  %v1539_v51 = vmul.f32 -1.442695, %v2423_v44 }
 0x10e   :  { %1409 = vst.msk [vmem:[#allocation6 + $0x108] sm:$0xff] %vm34_vm0, %v1345_v49  ;;  %v1722_v31 = vpop.eup %1721  ;;  %1382 = vst.msk [vmem:[#allocation6 + $0x30] sm:$0xff] %vm34_vm0, %v1318_v16  ;;  %v1316_v8 = vmul.f32 %v1720_v11, %v2230_v5  ;;  %1747 = vpow2.f32 %v1506_v60  ;;  %v1505_v7 = vmul.f32 -1.442695, %v2431_v56  ;;  %v2447_v47 = vpop.f32.mrf.mxu0  ;;  %v2460_v21 = vadd.f32 %v2176_v61, %v811_v4  ;;  %v841_v35 = vld [vmem:[#allocation2 + $0x180] sm:$0xff]  ;;  %v812_v58 = vld [vmem:[#allocation2 + $0x98] sm:$0xff] }
 0x10f   :  { %v1724_v26 = vpop.eup %1723  ;;  %1414 = vst.msk [vmem:[#allocation6 + $0x130] sm:$0xff] %vm34_vm0, %v1350_v29  ;;  %v1348_v59 = vmul.f32 %v1722_v31, %v2233_v6  ;;  %1749 = vpow2.f32 %v1538_v15  ;;  %v2449_v6 = vpop.f32.mrf.mxu1  ;;  %v2470_v12 = vadd.f32 %v2176_v61, %v809_v1  ;;  %v2473_v62 = vmul.f32 -1.442695, %v2457_v39 }
 0x110   :  { %v1726_v53 = vpop.eup %1725  ;;  %1380 = vst.msk [vmem:[#allocation6 + $0x20] sm:$0xff] %vm34_vm0, %v1316_v8  ;;  %v1157_v57 = vadd.f32 1.0, %v1724_v26  ;;  %1751 = vpow2.f32 %v1504_v52  ;;  %v2476_v16 = vmul.f32 -1.442695, %v2460_v21  ;;  %v844_v52 = vld [vmem:[#allocation2 + $0x198] sm:$0xff]  ;;  %v2486_v26 = vadd.f32 %v2176_v61, %v841_v35 }
 0x111   :  { %v1728_v46 = vpop.eup %1727  ;;  %1412 = vst.msk [vmem:[#allocation6 + $0x120] sm:$0xff] %vm34_vm0, %v1348_v59  ;;  %v1319_v5 = vmul.f32 %v1726_v53, %v2241_v24  ;;  %1753 = vpow2.f32 %v1536_v30  ;;  %v843_v24 = vld [vmem:[#allocation2 + $0x190] sm:$0xff]  ;;  %v2464_v41 = vpop.f32.mrf.mxu1  ;;  %v810_v59 = vld [vmem:[#allocation2 + $0x88] sm:$0xff]  ;;  %v2495_v2 = vadd.f32 %v2176_v61, %v844_v52  ;;  %v687_v4 = vadd.f32 %v2383_v17, %v225_v19 }
 0x112   :  { %v1730_v9 = vpop.eup %1729  ;;  %v1351_v50 = vmul.f32 %v1728_v46, %v2244_v25  ;;  %1755 = vrcp.f32 %v1157_v57  ;;  %v2467_v22 = vadd.f32 %v2176_v61, %v843_v24  ;;  %v2492_v46 = vadd.f32 %v2176_v61, %v812_v58 }
 0x113   :  { %v1732_v10 = vpop.eup %1731  ;;  %1383 = vst.msk [vmem:[#allocation6 + $0x38] sm:$0xff] %vm34_vm0, %v1319_v5  ;;  %v1317_v63 = vmul.f32 %v1730_v9, %v2252_v38  ;;  %1757 = vpow2.f32 %v1507_v48  ;;  %v2462_v38 = vpop.f32.mrf.mxu0  ;;  %v257_v48 = vld [vmem:[#allocation2 + $0x1d0] sm:$0xff]  ;;  %v223_v5 = vld [vmem:[#allocation2 + $0xc0] sm:$0xff]  ;;  %752 = vst.msk [vmem:[#allocation2 + $0xd0] sm:$0xff] %vm34_vm0, %v687_v4 }
 0x114   :  { %v1734_v20 = vpop.eup %1733  ;;  %1415 = vst.msk [vmem:[#allocation6 + $0x138] sm:$0xff] %vm34_vm0, %v1351_v50  ;;  %v1130_v36 = vadd.f32 1.0, %v1732_v10  ;;  %1759 = vpow2.f32 %v1539_v51  ;;  %v2480_v29 = vpop.f32.mrf.mxu1  ;;  %v2483_v8 = vmul.f32 -1.442695, %v2467_v22  ;;  %v2489_v51 = vmul.f32 -1.442695, %v2470_v12 }
 0x115   :  { %v1736_v13 = vpop.eup %1735  ;;  %1381 = vst.msk [vmem:[#allocation6 + $0x28] sm:$0xff] %vm34_vm0, %v1317_v63  ;;  %v1162_v25 = vadd.f32 1.0, %v1734_v20  ;;  %1761 = vpow2.f32 %v1505_v7  ;;  %v2478_v11 = vpop.f32.mrf.mxu0  ;;  %v255_v7 = vld [vmem:[#allocation2 + $0x1c0] sm:$0xff]  ;;  %v226_v10 = vld [vmem:[#allocation2 + $0xd8] sm:$0xff]  ;;  %v719_v1 = vadd.f32 %v2385_v34, %v257_v48  ;;  %v685_v17 = vadd.f32 %v2400_v28, %v223_v5  ;;  %v260_v5 = vld [vmem:[#allocation2 + $0x1e8] sm:$0xff] }
 0x116   :  { %v1738_v37 = vpop.eup %1737  ;;  %1763 = vrcp.f32 %v1130_v36  ;;  %v1128_v27 = vadd.f32 1.0, %v1736_v13  ;;  %v258_v63 = vld [vmem:[#allocation2 + $0x1d8] sm:$0xff]  ;;  %v2499_v36 = vadd.f32 %v2176_v61, %v810_v59  ;;  %v224_v13 = vld [vmem:[#allocation2 + $0xc8] sm:$0xff]  ;;  %v717_v35 = vadd.f32 %v2402_v0, %v255_v7 }
 0x117   :  { %v1740_v32 = vpop.eup %1739  ;;  %1765 = vrcp.f32 %v1162_v25  ;;  %v1160_v42 = vadd.f32 1.0, %v1738_v37  ;;  %v256_v25 = vld [vmem:[#allocation2 + $0x1c8] sm:$0xff]  ;;  %v1625_v37 = vpop.f32.mrf.mxu0  ;;  %784 = vst.msk [vmem:[#allocation2 + $0x1d0] sm:$0xff] %vm34_vm0, %v719_v1  ;;  %v688_v34 = vadd.f32 %v2433_v45, %v226_v10  ;;  %v720_v19 = vadd.f32 %v2435_v33, %v258_v63  ;;  %750 = vst.msk [vmem:[#allocation2 + $0xc0] sm:$0xff] %vm34_vm0, %v685_v17  ;;  %v262_v59 = vld [vmem:[#allocation2 + $0x1f8] sm:$0xff] }
 0x118   :  { %v1742_v60 = vpop.eup %1741  ;;  %1767 = vrcp.f32 %v1128_v27  ;;  %v1131_v18 = vadd.f32 1.0, %v1740_v32  ;;  %v1657_v27 = vpop.f32.mrf.mxu1  ;;  %782 = vst.msk [vmem:[#allocation2 + $0x1c0] sm:$0xff] %vm34_vm0, %v717_v35  ;;  %v686_v28 = vadd.f32 %v2447_v47, %v224_v13  ;;  %v718_v0 = vadd.f32 %v2449_v6, %v256_v25  ;;  %v815_v10 = vld [vmem:[#allocation2 + $0xb0] sm:$0xff]  ;;  %v2763_v25 = vld [vmem:[#allocation9_spill] sm:$0xff]  ;;  %v2764_v35 = vld [vmem:[#allocation10_spill] sm:$0xff] }
 0x119   :  { %v1744_v49 = vpop.eup %1743  ;;  %1769 = vrcp.f32 %v1160_v42  ;;  %v1163_v15 = vadd.f32 1.0, %v1742_v60  ;;  %v229_v60 = vld [vmem:[#allocation2 + $0xf0] sm:$0xff]  ;;  %753 = vst.msk [vmem:[#allocation2 + $0xd8] sm:$0xff] %vm34_vm0, %v688_v34  ;;  %785 = vst.msk [vmem:[#allocation2 + $0x1d8] sm:$0xff] %vm34_vm0, %v720_v19 }
 0x11a   :  { %v1746_v30 = vpop.eup %1745  ;;  %1771 = vrcp.f32 %v1131_v18  ;;  %v1129_v31 = vadd.f32 1.0, %v1744_v49  ;;  %v261_v18 = vld [vmem:[#allocation2 + $0x1f0] sm:$0xff]  ;;  %v227_v49 = vld [vmem:[#allocation2 + $0xe0] sm:$0xff]  ;;  %v649_v7 = vpop.f32.mrf.mxu1  ;;  %751 = vst.msk [vmem:[#allocation2 + $0xc8] sm:$0xff] %vm34_vm0, %v686_v28  ;;  %783 = vst.msk [vmem:[#allocation2 + $0x1c8] sm:$0xff] %vm34_vm0, %v718_v0 }
 0x11b   :  { %v1748_v53 = vpop.eup %1747  ;;  %1773 = vrcp.f32 %v1163_v15  ;;  %v1161_v57 = vadd.f32 1.0, %v1746_v30  ;;  %v259_v15 = vld [vmem:[#allocation2 + $0x1e0] sm:$0xff]  ;;  %v723_v33 = vadd.f32 %v2464_v41, %v261_v18  ;;  %v847_v1 = vld [vmem:[#allocation2 + $0x1b0] sm:$0xff]  ;;  %v1511_v18 = vmul.f32 -1.442695, %v2492_v46 }
 0x11c   :  { %v1750_v9 = vpop.eup %1749  ;;  %1775 = vrcp.f32 %v1129_v31  ;;  %v1134_v50 = vadd.f32 1.0, %v1748_v53  ;;  %v230_v31 = vld [vmem:[#allocation2 + $0xf8] sm:$0xff]  ;;  %v228_v53 = vld [vmem:[#allocation2 + $0xe8] sm:$0xff]  ;;  %v2765_v19 = vld [vmem:[#allocation11_spill] sm:$0xff]  ;;  %v1509_v0 = vmul.f32 -1.442695, %v2499_v36 }
 0x11d   :  { %v1752_v24 = vpop.eup %1751  ;;  %1777 = vrcp.f32 %v1161_v57  ;;  %v1166_v20 = vadd.f32 1.0, %v1750_v9  ;;  %v521_v57 = vpop.f32.mrf.mxu0  ;;  %v842_v9 = vld [vmem:[#allocation2 + $0x188] sm:$0xff]  ;;  %788 = vst.msk [vmem:[#allocation2 + $0x1f0] sm:$0xff] %vm34_vm0, %v723_v33  ;;  %v692_v63 = vadd.f32 %v1625_v37, %v230_v31  ;;  %v2533_v37 = vld [vmem:[%s2747_s2] ss:$0 sm:$0xff]  ;;  %s1974_s2 = smov [#allocation6]  }
 0x11e   :  { %v1754_v32 = vpop.eup %1753  ;;  %1779 = vrcp.f32 %v1134_v50  ;;  %v1132_v42 = vadd.f32 1.0, %v1752_v24  ;;  %v689_v50 = vadd.f32 %v2478_v11, %v227_v49  ;;  %v724_v24 = vadd.f32 %v1657_v27, %v262_v59  ;;  %v813_v27 = vld [vmem:[#allocation2 + $0xa0] sm:$0xff]  ;;  %v816_v59 = vld [vmem:[#allocation2 + $0xb8] sm:$0xff]  ;;  %s1445_s25 = sshll.u32 %s1974_s2, 4  ;;  %s1446_s25 = int_to_ptr.vmem [resolvable:$true] %s1445_s25 }
 0x11f   :  { %v1756_v58 = vpop.eup %1755  ;;  %1781 = vrcp.f32 %v1166_v20  ;;  %v1164_v61 = vadd.f32 1.0, %v1754_v32  ;;  %v690_v11 = vadd.f32 %v521_v57, %v228_v53  ;;  %757 = vst.msk [vmem:[#allocation2 + $0xf8] sm:$0xff] %vm34_vm0, %v692_v63  ;;  %v2561_v31 = vadd.f32 %v2533_v37, %v813_v27  ;;  %v848_v53 = vld [vmem:[#allocation2 + $0x1b8] sm:$0xff]  ;;  %s1946_s26 = scalar_lea.vmem %s1446_s25, 8192  ;;  %p1951_p6 = scmp.lt.s32.totalorder %s1446_s25, %s1446_s25 }
 0x120   :  { %v1758_v52 = vpop.eup %1757  ;;  %v1349_v30 = vmul.f32 %v1756_v58, %v2261_v54  ;;  %1783 = vrcp.f32 %v1132_v42  ;;  %v691_v54 = vadd.f32 %v2462_v38, %v229_v60  ;;  %v721_v38 = vadd.f32 %v2480_v29, %v259_v15  ;;  %754 = vst.msk [vmem:[#allocation2 + $0xe0] sm:$0xff] %vm34_vm0, %v689_v50  ;;  %789 = vst.msk [vmem:[#allocation2 + $0x1f8] sm:$0xff] %vm34_vm0, %v724_v24  ;;  %p1947_p5 = scmp.ne.s32.totalorder %s1446_s25, %s1946_s26  ;;  %p1952_p7 = scmp.lt.s32.totalorder %s1946_s26, %s1946_s26 }
 0x121   :  { %v1760_v48 = vpop.eup %1759  ;;  %1785 = vrcp.f32 %v1164_v61  ;;  %v1135_v45 = vadd.f32 1.0, %v1758_v52  ;;  %v722_v29 = vadd.f32 %v649_v7, %v260_v5  ;;  %v1540_v42 = vmul.f32 -1.442695, %v2486_v26  ;;  %v845_v61 = vld [vmem:[#allocation2 + $0x1a0] sm:$0xff]  ;;  %755 = vst.msk [vmem:[#allocation2 + $0xe8] sm:$0xff] %vm34_vm0, %v690_v11 }
 0x122   :  { %v1762_v47 = vpop.eup %1761  ;;  %1413 = vst.msk [vmem:[#allocation6 + $0x128] sm:$0xff] %vm34_vm0, %v1349_v30  ;;  %v1167_v6 = vadd.f32 1.0, %v1760_v48  ;;  %1787 = vpow2.f32 %v2473_v62  ;;  %756 = vst.msk [vmem:[#allocation2 + $0xf0] sm:$0xff] %vm34_vm0, %v691_v54  ;;  %v2545_v58 = vadd.f32 %v2533_v37, %v815_v10  ;;  %v1543_v15 = vmul.f32 -1.442695, %v2495_v2  ;;  %v2766_v30 = vld [vmem:[#allocation12_spill] sm:$0xff]  ;;  %p1953_p8 = por %p1952_p7, %p1951_p6 }
 0x123   :  { %v1764_v41 = vpop.eup %1763  ;;  %1789 = vrcp.f32 %v1135_v45  ;;  %v1133_v4 = vadd.f32 1.0, %v1762_v47  ;;  %786 = vst.msk [vmem:[#allocation2 + $0x1e0] sm:$0xff] %vm34_vm0, %v721_v38  ;;  %787 = vst.msk [vmem:[#allocation2 + $0x1e8] sm:$0xff] %vm34_vm0, %v722_v29  ;;  %v2567_v33 = vadd.f32 %v2533_v37, %v845_v61  ;;  %v814_v47 = vld [vmem:[#allocation2 + $0xa8] sm:$0xff]  ;;  %v1512_v63 = vmul.f32 -1.442695, %v2561_v31 }
 0x124   :  { %v1766_v62 = vpop.eup %1765  ;;  %v1322_v20 = vmul.f32 %v1764_v41, %v2270_v3  ;;  %1791 = vrcp.f32 %v1167_v6  ;;  %v2536_v3 = vadd.f32 %v2533_v37, %v842_v9  ;;  %v1514_v7 = vmul.f32 -1.442695, %v2545_v58  ;;  %v2769_v9 = vld [vmem:[#allocation15_spill] sm:$0xff]  ;;  %p1954_p9 = pnand %p1953_p8, %p1947_p5 }
 0x125   :  { %v1768_v13 = vpop.eup %1767  ;;  %v1354_v32 = vmul.f32 %v1766_v62, %v2763_v25  ;;  %1793 = vrcp.f32 %v1133_v4  ;;  %v2576_v41 = vadd.f32 %v2533_v37, %v816_v59  ;;  %v2582_v24 = vadd.f32 %v2533_v37, %v848_v53 }
 0x126   :  { %v1770_v17 = vpop.eup %1769  ;;  %1386 = vst.msk [vmem:[#allocation6 + $0x50] sm:$0xff] %vm34_vm0, %v1322_v20  ;;  %v1320_v60 = vmul.f32 %v1768_v13, %v2764_v35  ;;  %1795 = vpow2.f32 %v2476_v16  ;;  %v2554_v16 = vadd.f32 %v2533_v37, %v847_v1  ;;  %v1541_v54 = vmul.f32 -1.442695, %v2536_v3 }
 0x127   :  { %v1772_v34 = vpop.eup %1771  ;;  %1418 = vst.msk [vmem:[#allocation6 + $0x150] sm:$0xff] %vm34_vm0, %v1354_v32  ;;  %v1352_v49 = vmul.f32 %v1770_v17, %v2765_v19  ;;  %1797 = vpow2.f32 %v2483_v8  ;;  %v2767_v8 = vld [vmem:[#allocation13_spill] sm:$0xff]  ;;  %v1544_v1 = vmul.f32 -1.442695, %v2567_v33  ;;  %v2588_v11 = vadd.f32 %v2533_v37, %v814_v47  ;;  %v851_v47 = vld [vmem:[#allocation2 + $0x1d0] sm:$0xff] }
 0x128   :  { %v1774_v52 = vpop.eup %1773  ;;  %1384 = vst.msk [vmem:[#allocation6 + $0x40] sm:$0xff] %vm34_vm0, %v1320_v60  ;;  %v1323_v28 = vmul.f32 %v1772_v34, %v2766_v30  ;;  %1799 = vpow2.f32 %v2489_v51  ;;  %v2768_v51 = vld [vmem:[#allocation14_spill] sm:$0xff]  ;;  %v1546_v38 = vmul.f32 -1.442695, %v2554_v16  ;;  %v1547_v27 = vmul.f32 -1.442695, %v2582_v24 }
 0x129   :  { %v1776_v48 = vpop.eup %1775  ;;  %1416 = vst.msk [vmem:[#allocation6 + $0x140] sm:$0xff] %vm34_vm0, %v1352_v49  ;;  %v1355_v45 = vmul.f32 %v1774_v52, %v2767_v8  ;;  %1801 = vpow2.f32 %v1540_v42  ;;  %v1513_v35 = vmul.f32 -1.442695, %v2588_v11 }
 0x12a   :  { %v1778_v57 = vpop.eup %1777  ;;  %1387 = vst.msk [vmem:[#allocation6 + $0x58] sm:$0xff] %vm34_vm0, %v1323_v28  ;;  %v1321_v5 = vmul.f32 %v1776_v48, %v2768_v51  ;;  %1803 = vpow2.f32 %v1511_v18  ;;  %v846_v28 = vld [vmem:[#allocation2 + $0x1a8] sm:$0xff]  ;;  %v819_v51 = vld [vmem:[#allocation2 + $0xd0] sm:$0xff] }
 0x12b   :  { %v1780_v6 = vpop.eup %1779  ;;  %1419 = vst.msk [vmem:[#allocation6 + $0x158] sm:$0xff] %vm34_vm0, %v1355_v45  ;;  %v1353_v50 = vmul.f32 %v1778_v57, %v2769_v9  ;;  %1805 = vpow2.f32 %v1543_v15 }
 0x12c   :  { %v1782_v4 = vpop.eup %1781  ;;  %1385 = vst.msk [vmem:[#allocation6 + $0x48] sm:$0xff] %vm34_vm0, %v1321_v5  ;;  %v1326_v10 = vmul.f32 %v1780_v6, %v2332_v14  ;;  %1807 = vpow2.f32 %v1509_v0 }
 0x12d   :  { %v1784_v62 = vpop.eup %1783  ;;  %1417 = vst.msk [vmem:[#allocation6 + $0x148] sm:$0xff] %vm34_vm0, %v1353_v50  ;;  %v1358_v20 = vmul.f32 %v1782_v4, %v2335_v23  ;;  %1809 = vpow2.f32 %v1541_v54  ;;  %v1515_v23 = vmul.f32 -1.442695, %v2576_v41  ;;  %v2606_v54 = vadd.f32 %v2533_v37, %v846_v28  ;;  %v817_v50 = vld [vmem:[#allocation2 + $0xc0] sm:$0xff]  ;;  %v855_v28 = vld [vmem:[#allocation2 + $0x1f0] sm:$0xff] }
 0x12e   :  { %v1786_v29 = vpop.eup %1785  ;;  %1390 = vst.msk [vmem:[#allocation6 + $0x70] sm:$0xff] %vm34_vm0, %v1326_v10  ;;  %v1324_v14 = vmul.f32 %v1784_v62, %v2350_v55  ;;  %1811 = vpow2.f32 %v1514_v7  ;;  %v849_v62 = vld [vmem:[#allocation2 + $0x1c0] sm:$0xff] }
 0x12f   :  { %v1788_v13 = vpop.eup %1787  ;;  %1422 = vst.msk [vmem:[#allocation6 + $0x170] sm:$0xff] %vm34_vm0, %v1358_v20  ;;  %v1356_v25 = vmul.f32 %v1786_v29, %v2396_v40  ;;  %1813 = vpow2.f32 %v1546_v38  ;;  %v1545_v10 = vmul.f32 -1.442695, %v2606_v54  ;;  %v2613_v29 = vadd.f32 %v2533_v37, %v851_v47 }
 0x130   :  { %v1790_v32 = vpop.eup %1789  ;;  %1388 = vst.msk [vmem:[#allocation6 + $0x60] sm:$0xff] %vm34_vm0, %v1324_v14  ;;  %v1165_v42 = vadd.f32 1.0, %v1788_v13  ;;  %1815 = vpow2.f32 %v1512_v63  ;;  %v2610_v63 = vadd.f32 %v2533_v37, %v819_v51  ;;  %v820_v14 = vld [vmem:[#allocation2 + $0xd8] sm:$0xff]  ;;  %v853_v51 = vld [vmem:[#allocation2 + $0x1e0] sm:$0xff]  ;;  %v2651_v47 = vadd.f32 %v2533_v37, %v855_v28 }
 0x131   :  { %v1792_v17 = vpop.eup %1791  ;;  %1420 = vst.msk [vmem:[#allocation6 + $0x160] sm:$0xff] %vm34_vm0, %v1356_v25  ;;  %v1327_v55 = vmul.f32 %v1790_v32, %v2415_v43  ;;  %1817 = vpow2.f32 %v1544_v1  ;;  %v852_v32 = vld [vmem:[#allocation2 + $0x1d8] sm:$0xff] }
 0x132   :  { %v1794_v60 = vpop.eup %1793  ;;  %v1359_v40 = vmul.f32 %v1792_v17, %v2423_v44  ;;  %1819 = vrcp.f32 %v1165_v42  ;;  %v2620_v17 = vadd.f32 %v2533_v37, %v849_v62  ;;  %v2663_v62 = vadd.f32 %v2533_v37, %v853_v51 }
 0x133   :  { %v1796_v18 = vpop.eup %1795  ;;  %1391 = vst.msk [vmem:[#allocation6 + $0x78] sm:$0xff] %vm34_vm0, %v1327_v55  ;;  %v1325_v61 = vmul.f32 %v1794_v60, %v2431_v56  ;;  %1821 = vpow2.f32 %v1515_v23  ;;  %v2617_v23 = vadd.f32 %v2533_v37, %v817_v50  ;;  %v818_v55 = vld [vmem:[#allocation2 + $0xc8] sm:$0xff] }
 0x134   :  { %v1798_v34 = vpop.eup %1797  ;;  %1423 = vst.msk [vmem:[#allocation6 + $0x178] sm:$0xff] %vm34_vm0, %v1359_v40  ;;  %v1138_v19 = vadd.f32 1.0, %v1796_v18  ;;  %1823 = vpow2.f32 %v1547_v27  ;;  %v1518_v40 = vmul.f32 -1.442695, %v2610_v63  ;;  %v850_v18 = vld [vmem:[#allocation2 + $0x1c8] sm:$0xff] }
 0x135   :  { %v1800_v49 = vpop.eup %1799  ;;  %1389 = vst.msk [vmem:[#allocation6 + $0x68] sm:$0xff] %vm34_vm0, %v1325_v61  ;;  %v1170_v43 = vadd.f32 1.0, %v1798_v34  ;;  %1825 = vpow2.f32 %v1513_v35 }
 0x136   :  { %v1802_v15 = vpop.eup %1801  ;;  %1827 = vrcp.f32 %v1138_v19  ;;  %v1136_v44 = vadd.f32 1.0, %v1800_v49  ;;  %v1550_v19 = vmul.f32 -1.442695, %v2613_v29  ;;  %v2629_v49 = vadd.f32 %v2533_v37, %v852_v32 }
 0x137   :  { %v1804_v52 = vpop.eup %1803  ;;  %1829 = vrcp.f32 %v1170_v43  ;;  %v1168_v30 = vadd.f32 1.0, %v1802_v15  ;;  %v823_v43 = vld [vmem:[#allocation2 + $0xf0] sm:$0xff]  ;;  %v1554_v32 = vmul.f32 -1.442695, %v2651_v47 }
 0x138   :  { %v1806_v0 = vpop.eup %1805  ;;  %1831 = vrcp.f32 %v1136_v44  ;;  %v1139_v56 = vadd.f32 1.0, %v1804_v52  ;;  %v1516_v52 = vmul.f32 -1.442695, %v2617_v23 }
 0x139   :  { %v1808_v59 = vpop.eup %1807  ;;  %1833 = vrcp.f32 %v1168_v30  ;;  %v1171_v48 = vadd.f32 1.0, %v1806_v0  ;;  %v2634_v30 = vadd.f32 %v2533_v37, %v818_v55 }
 0x13a   :  { %v1810_v8 = vpop.eup %1809  ;;  %1835 = vrcp.f32 %v1139_v56  ;;  %v1137_v45 = vadd.f32 1.0, %v1808_v59  ;;  %v1548_v59 = vmul.f32 -1.442695, %v2620_v17 }
 0x13b   :  { %v1812_v53 = vpop.eup %1811  ;;  %1837 = vrcp.f32 %v1171_v48  ;;  %v1169_v57 = vadd.f32 1.0, %v1810_v8  ;;  %v2639_v48 = vadd.f32 %v2533_v37, %v850_v18  ;;  %v821_v8 = vld [vmem:[#allocation2 + $0xe0] sm:$0xff] }
 0x13c   :  { %v1814_v5 = vpop.eup %1813  ;;  %1839 = vrcp.f32 %v1137_v45  ;;  %v1142_v7 = vadd.f32 1.0, %v1812_v53  ;;  %v2657_v50 = vadd.f32 %v2533_v37, %v821_v8 }
 0x13d   :  { %v1816_v6 = vpop.eup %1815  ;;  %1841 = vrcp.f32 %v1169_v57  ;;  %v1174_v9 = vadd.f32 1.0, %v1814_v5  ;;  %v2645_v57 = vadd.f32 %v2533_v37, %v823_v43 }
 0x13e   :  { %v1818_v38 = vpop.eup %1817  ;;  %1843 = vrcp.f32 %v1142_v7  ;;  %v1140_v4 = vadd.f32 1.0, %v1816_v6  ;;  %v1551_v7 = vmul.f32 -1.442695, %v2629_v49  ;;  %v1520_v55 = vmul.f32 -1.442695, %v2657_v50 }
 0x13f   :  { %v1820_v20 = vpop.eup %1819  ;;  %1845 = vrcp.f32 %v1174_v9  ;;  %v1172_v1 = vadd.f32 1.0, %v1818_v38  ;;  %v1517_v9 = vmul.f32 -1.442695, %v2634_v30  ;;  %v824_v38 = vld [vmem:[#allocation2 + $0xf8] sm:$0xff] }
 0x140   :  { %v1822_v13 = vpop.eup %1821  ;;  %v1357_v25 = vmul.f32 %v1820_v20, %v2457_v39  ;;  %1847 = vrcp.f32 %v1140_v4  ;;  %v2625_v39 = vadd.f32 %v2533_v37, %v820_v14  ;;  %v856_v20 = vld [vmem:[#allocation2 + $0x1f8] sm:$0xff]  ;;  %v1522_v14 = vmul.f32 -1.442695, %v2645_v57 }
 0x141   :  { %v1824_v42 = vpop.eup %1823  ;;  %1849 = vrcp.f32 %v1172_v1  ;;  %v1143_v27 = vadd.f32 1.0, %v1822_v13  ;;  %v822_v13 = vld [vmem:[#allocation2 + $0xe8] sm:$0xff] }
 0x142   :  { %v1826_v35 = vpop.eup %1825  ;;  %1421 = vst.msk [vmem:[#allocation6 + $0x168] sm:$0xff] %vm34_vm0, %v1357_v25  ;;  %v1175_v60 = vadd.f32 1.0, %v1824_v42  ;;  %1851 = vpow2.f32 %v1545_v10  ;;  %v1519_v53 = vmul.f32 -1.442695, %v2625_v39  ;;  %v1549_v10 = vmul.f32 -1.442695, %v2639_v48 }
 0x143   :  { %v1828_v61 = vpop.eup %1827  ;;  %1853 = vrcp.f32 %v1143_v27  ;;  %v1141_v34 = vadd.f32 1.0, %v1826_v35  ;;  %v2672_v42 = vadd.f32 %v2533_v37, %v824_v38  ;;  %v2678_v35 = vadd.f32 %v2533_v37, %v856_v20 }
 0x144   :  { %v1830_v15 = vpop.eup %1829  ;;  %v1330_v44 = vmul.f32 %v1828_v61, %v2460_v21  ;;  %1855 = vrcp.f32 %v1175_v60  ;;  %v2684_v18 = vadd.f32 %v2533_v37, %v822_v13 }
 0x145   :  { %v1832_v0 = vpop.eup %1831  ;;  %v1362_v56 = vmul.f32 %v1830_v15, %v2467_v22  ;;  %1857 = vrcp.f32 %v1141_v34 }
 0x146   :  { %v1834_v45 = vpop.eup %1833  ;;  %1394 = vst.msk [vmem:[#allocation6 + $0x90] sm:$0xff] %vm34_vm0, %v1330_v44  ;;  %v1328_v21 = vmul.f32 %v1832_v0, %v2470_v12  ;;  %1859 = vpow2.f32 %v1518_v40  ;;  %v1552_v40 = vmul.f32 -1.442695, %v2663_v62  ;;  %v1555_v44 = vmul.f32 -1.442695, %v2678_v35 }
 0x147   :  { %v1836_v22 = vpop.eup %1835  ;;  %1426 = vst.msk [vmem:[#allocation6 + $0x190] sm:$0xff] %vm34_vm0, %v1362_v56  ;;  %v1360_v5 = vmul.f32 %v1834_v45, %v2486_v26  ;;  %1861 = vpow2.f32 %v1550_v19  ;;  %v1521_v28 = vmul.f32 -1.442695, %v2684_v18 }
 0x148   :  { %v1838_v6 = vpop.eup %1837  ;;  %1392 = vst.msk [vmem:[#allocation6 + $0x80] sm:$0xff] %vm34_vm0, %v1328_v21  ;;  %v1331_v12 = vmul.f32 %v1836_v22, %v2492_v46  ;;  %1863 = vpow2.f32 %v1516_v52 }
 0x149   :  { %v1840_v4 = vpop.eup %1839  ;;  %1424 = vst.msk [vmem:[#allocation6 + $0x180] sm:$0xff] %vm34_vm0, %v1360_v5  ;;  %v1363_v26 = vmul.f32 %v1838_v6, %v2495_v2  ;;  %1865 = vpow2.f32 %v1548_v59  ;;  %v854_v5 = vld [vmem:[#allocation2 + $0x1e8] sm:$0xff] }
 0x14a   :  { %v1842_v46 = vpop.eup %1841  ;;  %1395 = vst.msk [vmem:[#allocation6 + $0x98] sm:$0xff] %vm34_vm0, %v1331_v12  ;;  %v1329_v1 = vmul.f32 %v1840_v4, %v2499_v36  ;;  %1867 = vpow2.f32 %v1519_v53  ;;  %v2702_v4 = vadd.f32 %v2533_v37, %v854_v5 }
 0x14b   :  { %v1844_v25 = vpop.eup %1843  ;;  %1427 = vst.msk [vmem:[#allocation6 + $0x198] sm:$0xff] %vm34_vm0, %v1363_v26  ;;  %v1361_v2 = vmul.f32 %v1842_v46, %v2536_v3  ;;  %1869 = vpow2.f32 %v1551_v7 }
 0x14c   :  { %v1846_v27 = vpop.eup %1845  ;;  %1393 = vst.msk [vmem:[#allocation6 + $0x88] sm:$0xff] %vm34_vm0, %v1329_v1  ;;  %v1334_v36 = vmul.f32 %v1844_v25, %v2545_v58  ;;  %1871 = vpow2.f32 %v1517_v9 }
 0x14d   :  { %v1848_v60 = vpop.eup %1847  ;;  %1425 = vst.msk [vmem:[#allocation6 + $0x188] sm:$0xff] %vm34_vm0, %v1361_v2  ;;  %v1366_v3 = vmul.f32 %v1846_v27, %v2554_v16  ;;  %1873 = vpow2.f32 %v1549_v10  ;;  %v1523_v16 = vmul.f32 -1.442695, %v2672_v42  ;;  %v1553_v2 = vmul.f32 -1.442695, %v2702_v4 }
 0x14e   :  { %v1850_v61 = vpop.eup %1849  ;;  %1398 = vst.msk [vmem:[#allocation6 + $0xb0] sm:$0xff] %vm34_vm0, %v1334_v36  ;;  %v1332_v58 = vmul.f32 %v1848_v60, %v2561_v31  ;;  %1875 = vpow2.f32 %v1522_v14 }
 0x14f   :  { %v1852_v34 = vpop.eup %1851  ;;  %1430 = vst.msk [vmem:[#allocation6 + $0x1b0] sm:$0xff] %vm34_vm0, %v1366_v3  ;;  %v1364_v19 = vmul.f32 %v1850_v61, %v2567_v33  ;;  %1877 = vpow2.f32 %v1554_v32 }
 0x150   :  { %v1854_v43 = vpop.eup %1853  ;;  %1396 = vst.msk [vmem:[#allocation6 + $0xa0] sm:$0xff] %vm34_vm0, %v1332_v58  ;;  %v1173_v15 = vadd.f32 1.0, %v1852_v34  ;;  %1879 = vpow2.f32 %v1520_v55 }
 0x151   :  { %v1856_v52 = vpop.eup %1855  ;;  %1428 = vst.msk [vmem:[#allocation6 + $0x1a0] sm:$0xff] %vm34_vm0, %v1364_v19  ;;  %v1335_v31 = vmul.f32 %v1854_v43, %v2576_v41  ;;  %1881 = vpow2.f32 %v1552_v40 }
 0x152   :  { %v1858_v0 = vpop.eup %1857  ;;  %v1367_v33 = vmul.f32 %v1856_v52, %v2582_v24  ;;  %1883 = vrcp.f32 %v1173_v15 }
 0x153   :  { %v1860_v56 = vpop.eup %1859  ;;  %1399 = vst.msk [vmem:[#allocation6 + $0xb8] sm:$0xff] %vm34_vm0, %v1335_v31  ;;  %v1333_v59 = vmul.f32 %v1858_v0, %v2588_v11  ;;  %1885 = vpow2.f32 %v1523_v16 }
 0x154   :  { %v1862_v8 = vpop.eup %1861  ;;  %1431 = vst.msk [vmem:[#allocation6 + $0x1b8] sm:$0xff] %vm34_vm0, %v1367_v33  ;;  %v1146_v45 = vadd.f32 1.0, %v1860_v56  ;;  %1887 = vpow2.f32 %v1555_v44 }
 0x155   :  { %v1864_v21 = vpop.eup %1863  ;;  %1397 = vst.msk [vmem:[#allocation6 + $0xa8] sm:$0xff] %vm34_vm0, %v1333_v59  ;;  %v1178_v41 = vadd.f32 1.0, %v1862_v8  ;;  %1889 = vpow2.f32 %v1521_v28 }
 0x156   :  { %v1866_v53 = vpop.eup %1865  ;;  %1891 = vrcp.f32 %v1146_v45  ;;  %v1144_v24 = vadd.f32 1.0, %v1864_v21 }
 0x157   :  { %v1868_v51 = vpop.eup %1867  ;;  %1893 = vrcp.f32 %v1178_v41  ;;  %v1176_v22 = vadd.f32 1.0, %v1866_v53 }
 0x158   :  { %v1870_v7 = vpop.eup %1869  ;;  %1895 = vrcp.f32 %v1144_v24  ;;  %v1147_v11 = vadd.f32 1.0, %v1868_v51 }
 0x159   :  { %v1872_v6 = vpop.eup %1871  ;;  %1897 = vrcp.f32 %v1176_v22  ;;  %v1179_v12 = vadd.f32 1.0, %v1870_v7 }
 0x15a   :  { %v1874_v9 = vpop.eup %1873  ;;  %1899 = vrcp.f32 %v1147_v11  ;;  %v1145_v38 = vadd.f32 1.0, %v1872_v6 }
 0x15b   :  { %v1876_v26 = vpop.eup %1875  ;;  %1901 = vrcp.f32 %v1179_v12  ;;  %v1177_v10 = vadd.f32 1.0, %v1874_v9 }
 0x15c   :  { %v1878_v20 = vpop.eup %1877  ;;  %1903 = vrcp.f32 %v1145_v38  ;;  %v1150_v46 = vadd.f32 1.0, %v1876_v26 }
 0x15d   :  { %v1880_v1 = vpop.eup %1879  ;;  %1905 = vrcp.f32 %v1177_v10  ;;  %v1182_v14 = vadd.f32 1.0, %v1878_v20 }
 0x15e   :  { %v1882_v13 = vpop.eup %1881  ;;  %1907 = vrcp.f32 %v1150_v46  ;;  %v1148_v25 = vadd.f32 1.0, %v1880_v1 }
 0x15f   :  { %v1884_v32 = vpop.eup %1883  ;;  %1909 = vrcp.f32 %v1182_v14  ;;  %v1180_v27 = vadd.f32 1.0, %v1882_v13 }
 0x160   :  { %v1886_v36 = vpop.eup %1885  ;;  %v1365_v37 = vmul.f32 %v1884_v32, %v2606_v54  ;;  %1911 = vrcp.f32 %v1148_v25 }
 0x161   :  { %v1888_v55 = vpop.eup %1887  ;;  %1913 = vrcp.f32 %v1180_v27  ;;  %v1151_v60 = vadd.f32 1.0, %v1886_v36 }
 0x162   :  { %v1890_v3 = vpop.eup %1889  ;;  %1429 = vst.msk [vmem:[#allocation6 + $0x1a8] sm:$0xff] %vm34_vm0, %v1365_v37  ;;  %v1183_v40 = vadd.f32 1.0, %v1888_v55  ;;  %1915 = vpow2.f32 %v1553_v2 }
 0x163   :  { %v1892_v61 = vpop.eup %1891  ;;  %1917 = vrcp.f32 %v1151_v60  ;;  %v1149_v58 = vadd.f32 1.0, %v1890_v3 }
 0x164   :  { %v1894_v34 = vpop.eup %1893  ;;  %v1338_v19 = vmul.f32 %v1892_v61, %v2610_v63  ;;  %1919 = vrcp.f32 %v1183_v40 }
 0x165   :  { %v1896_v16 = vpop.eup %1895  ;;  %v1370_v43 = vmul.f32 %v1894_v34, %v2613_v29  ;;  %1921 = vrcp.f32 %v1149_v58 }
 0x166   :  { %v1898_v54 = vpop.eup %1897  ;;  %1402 = vst.msk [vmem:[#allocation6 + $0xd0] sm:$0xff] %vm34_vm0, %v1338_v19  ;;  %v1336_v15 = vmul.f32 %v1896_v16, %v2617_v23 }
 0x167   :  { %v1900_v44 = vpop.eup %1899  ;;  %1434 = vst.msk [vmem:[#allocation6 + $0x1d0] sm:$0xff] %vm34_vm0, %v1370_v43  ;;  %v1368_v52 = vmul.f32 %v1898_v54, %v2620_v17 }
 0x168   :  { %v1902_v31 = vpop.eup %1901  ;;  %1400 = vst.msk [vmem:[#allocation6 + $0xc0] sm:$0xff] %vm34_vm0, %v1336_v15  ;;  %v1339_v63 = vmul.f32 %v1900_v44, %v2625_v39 }
 0x169   :  { %v1904_v28 = vpop.eup %1903  ;;  %1432 = vst.msk [vmem:[#allocation6 + $0x1c0] sm:$0xff] %vm34_vm0, %v1368_v52  ;;  %v1371_v29 = vmul.f32 %v1902_v31, %v2629_v49 }
 0x16a   :  { %v1906_v0 = vpop.eup %1905  ;;  %1403 = vst.msk [vmem:[#allocation6 + $0xd8] sm:$0xff] %vm34_vm0, %v1339_v63  ;;  %v1337_v23 = vmul.f32 %v1904_v28, %v2634_v30 }
 0x16b   :  { %v1908_v33 = vpop.eup %1907  ;;  %1435 = vst.msk [vmem:[#allocation6 + $0x1d8] sm:$0xff] %vm34_vm0, %v1371_v29  ;;  %v1369_v17 = vmul.f32 %v1906_v0, %v2639_v48 }
 0x16c   :  { %v1910_v56 = vpop.eup %1909  ;;  %1401 = vst.msk [vmem:[#allocation6 + $0xc8] sm:$0xff] %vm34_vm0, %v1337_v23  ;;  %v1342_v39 = vmul.f32 %v1908_v33, %v2645_v57 }
 0x16d   :  { %v1912_v59 = vpop.eup %1911  ;;  %1433 = vst.msk [vmem:[#allocation6 + $0x1c8] sm:$0xff] %vm34_vm0, %v1369_v17  ;;  %v1374_v49 = vmul.f32 %v1910_v56, %v2651_v47 }
 0x16e   :  { %v1914_v8 = vpop.eup %1913  ;;  %1406 = vst.msk [vmem:[#allocation6 + $0xf0] sm:$0xff] %vm34_vm0, %v1342_v39  ;;  %v1340_v30 = vmul.f32 %v1912_v59, %v2657_v50 }
 0x16f   :  { %v1916_v45 = vpop.eup %1915  ;;  %1438 = vst.msk [vmem:[#allocation6 + $0x1f0] sm:$0xff] %vm34_vm0, %v1374_v49  ;;  %v1372_v48 = vmul.f32 %v1914_v8, %v2663_v62 }
 0x170   :  { %v1918_v21 = vpop.eup %1917  ;;  %1404 = vst.msk [vmem:[#allocation6 + $0xe0] sm:$0xff] %vm34_vm0, %v1340_v30  ;;  %v1181_v41 = vadd.f32 1.0, %v1916_v45 }
 0x171   :  { %v1920_v57 = vpop.eup %1919  ;;  %1436 = vst.msk [vmem:[#allocation6 + $0x1e0] sm:$0xff] %vm34_vm0, %v1372_v48  ;;  %v1343_v53 = vmul.f32 %v1918_v21, %v2672_v42 }
 0x172   :  { %v1922_v47 = vpop.eup %1921  ;;  %v1375_v24 = vmul.f32 %v1920_v57, %v2678_v35  ;;  %1923 = vrcp.f32 %v1181_v41 }
 0x173   :  { %1407 = vst.msk [vmem:[#allocation6 + $0xf8] sm:$0xff] %vm34_vm0, %v1343_v53  ;;  %v1341_v50 = vmul.f32 %v1922_v47, %v2684_v18 }
 0x174   :  { %1439 = vst.msk [vmem:[#allocation6 + $0x1f8] sm:$0xff] %vm34_vm0, %v1375_v24 }
 0x175   :  { %1405 = vst.msk [vmem:[#allocation6 + $0xe8] sm:$0xff] %vm34_vm0, %v1341_v50 }
 0x17f   :  { %v1924_v62 = vpop.eup %1923 }
 0x180   :  { %v1373_v51 = vmul.f32 %v1924_v62, %v2702_v4 }
 0x182   :  { %1437 = vst.msk [vmem:[#allocation6 + $0x1e8] sm:$0xff] %vm34_vm0, %v1373_v51 }
 0x183   :  { %1957 = shalt.err (!%p1954_p9)
}
 0x184   :  { %1451 = dma.vmem_to_hbm [thread:$0]  %s1446_s25, 8192, %s2748_s3, [#allocation5], %s1971_s15, %s1971_s15, %s1972_s16  }
 0x185   :  { %1968 = dma.done.wait [#allocation5], 8192  }
 0x186   :  { %1969 = vsyncadd [#allocation5], 4294959104 }
 0x187   :  { %1455 = vsyncpa [#allocation4], 1 }
 0x188   :  { %1456 = vsyncpa [#allocation5], 1 }

</bundles_post_ra>
